<compile_context>
chip_gen: v6e
topology: v6e:2x2x1
jax: 0.10.0
libtpu: 0.0.40
codegen_flags: <defaults>
</compile_context>

<pallas_src>
import jax
import jax.numpy as jnp
import numpy as np
from jax.experimental import pallas as pl
from jax.experimental.pallas import tpu as pltpu


# ---------------------------------------------------------------------------
# Fused bidirectional GRU kernel: per-chunk input projection + unrolled recurrence
# ---------------------------------------------------------------------------
def _bigru_fused_kernel(xf_ref, xb_ref, wih_ref, whh_ref, bgx_ref, bhn_ref,
                        outf_ref, outb_ref, gxf_s, gxb_s, hf_ref, hb_ref):
    """One time-chunk of the fused fwd+bwd GRU.

    xf_ref / xb_ref : (T, B, I) time-major input chunks (bwd chunk arrives in reversed
                      chunk order via its index_map)
    wih_ref         : (2, I, 3H) pre-transposed input weights (dir-stacked)
    whh_ref         : (2, H, 3H) pre-transposed recurrent weights
    bgx_ref         : (2, 1, 3H) b_ih with the r/z thirds of b_hh folded in
    bhn_ref         : (2, 1, H)  n-part of b_hh (must stay inside r * (.))
    outf_ref/outb_ref : (T, B, H) per-chunk output blocks (time-major)
    gxf_s / gxb_s   : (T, B, 3H) f32 VMEM scratch for the chunk's gate pre-activations
    hf_ref / hb_ref : (B, H) f32 hidden-state carries (persist across chunks)
    """
    t_block, bsz, in_size = xf_ref.shape
    h = hf_ref.shape[-1]
    g3 = 3 * h

    @pl.when(pl.program_id(0) == 0)
    def _():
        hf_ref[...] = jnp.zeros_like(hf_ref)
        hb_ref[...] = jnp.zeros_like(hb_ref)

    # ---- chunk preamble: fused input projection (bulk MXU matmuls, no HBM gx) ----
    xf2 = xf_ref[...].reshape(t_block * bsz, in_size)
    xb2 = xb_ref[...].reshape(t_block * bsz, in_size)
    gxf_s[...] = (jnp.dot(xf2, wih_ref[0], preferred_element_type=jnp.float32)
                  + bgx_ref[0]).reshape(t_block, bsz, g3)
    gxb_s[...] = (jnp.dot(xb2, wih_ref[1], preferred_element_type=jnp.float32)
                  + bgx_ref[1]).reshape(t_block, bsz, g3)

    # Hoisted loop invariants (weights, n-bias broadcast, hidden carries).
    whf = whh_ref[0]                                    # (H, 3H)
    whb = whh_ref[1]
    bnf = jnp.broadcast_to(bhn_ref[0], (bsz, h))        # hoisted out of the loop
    bnb = jnp.broadcast_to(bhn_ref[1], (bsz, h))
    h_f = hf_ref[...]
    h_b = hb_ref[...]

    # Statically unrolled recurrence over the chunk (t is a Python int -> static slices,
    # dense (B, *) tile loads/stores in time-major layout).
    for t in range(t_block):
        ghf = jnp.dot(h_f, whf, preferred_element_type=jnp.float32)   # (B, 3H)
        ghb = jnp.dot(h_b, whb, preferred_element_type=jnp.float32)   # (B, 3H)
        gxf = gxf_s[t]                                                 # (B, 3H)
        gxb = gxb_s[t_block - 1 - t]                                   # (B, 3H)

        rf = jax.nn.sigmoid(gxf[:, :h] + ghf[:, :h])
        zf = jax.nn.sigmoid(gxf[:, h:2 * h] + ghf[:, h:2 * h])
        nf = jnp.tanh(gxf[:, 2 * h:] + rf * (ghf[:, 2 * h:] + bnf))
        h_f = (1.0 - zf) * nf + zf * h_f
        outf_ref[t] = h_f.astype(outf_ref.dtype)

        rb = jax.nn.sigmoid(gxb[:, :h] + ghb[:, :h])
        zb = jax.nn.sigmoid(gxb[:, h:2 * h] + ghb[:, h:2 * h])
        nb = jnp.tanh(gxb[:, 2 * h:] + rb * (ghb[:, 2 * h:] + bnb))
        h_b = (1.0 - zb) * nb + zb * h_b
        outb_ref[t_block - 1 - t] = h_b.astype(outb_ref.dtype)

    hf_ref[...] = h_f   # carry hidden state to the next chunk
    hb_ref[...] = h_b


def _pick_time_block(s, b, in_size, h_size, dtype_bytes=4, cap=32,
                     budget_bytes=12 * 1024 * 1024, override=None):
    """Largest divisor of S (<= cap) whose per-chunk VMEM working set fits the budget."""
    if override is not None and s % override == 0:
        return override
    g3 = 3 * h_size
    # t-independent bytes: weights + biases + h carries.
    fixed = dtype_bytes * (2 * in_size * g3 + 2 * h_size * g3
                           + 2 * g3 + 2 * h_size + 2 * b * h_size)
    # per-time-step bytes: double-buffered x blocks + out blocks (2 dirs) + gx scratch.
    per_t = dtype_bytes * b * (2 * 2 * in_size + 2 * 2 * h_size + 2 * g3)
    best = 1
    for t in range(1, min(s, cap) + 1):
        if s % t:
            continue
        if fixed + t * per_t <= budget_bytes:
            best = t
    return best


def bigru_fused(x_tm, w_ih, w_hh, b_gx, b_hn, h_size, time_block=None):
    """x_tm: (S, B, I) time-major. Returns (out_f, out_b), each (S, B, H) time-major."""
    s, b, i = x_tm.shape
    g3 = 3 * h_size
    t_block = _pick_time_block(s, b, i, h_size, override=time_block)
    n_chunks = s // t_block
    const3 = lambda c: (0, 0, 0)

    return pl.pallas_call(
        _bigru_fused_kernel,
        out_shape=(jax.ShapeDtypeStruct((s, b, h_size), x_tm.dtype),
                   jax.ShapeDtypeStruct((s, b, h_size), x_tm.dtype)),
        grid_spec=pltpu.PrefetchScalarGridSpec(
            num_scalar_prefetch=0,
            grid=(n_chunks,),
            in_specs=[
                pl.BlockSpec((t_block, b, i), lambda c: (c, 0, 0)),                   # x fwd
                pl.BlockSpec((t_block, b, i), lambda c: (n_chunks - 1 - c, 0, 0)),    # x bwd
                pl.BlockSpec((2, i, g3), const3),                                     # W_ih
                pl.BlockSpec((2, h_size, g3), const3),                                # W_hh
                pl.BlockSpec((2, 1, g3), const3),                                     # b_gx
                pl.BlockSpec((2, 1, h_size), const3),                                 # b_hn
            ],
            out_specs=[
                pl.BlockSpec((t_block, b, h_size), lambda c: (c, 0, 0)),
                pl.BlockSpec((t_block, b, h_size), lambda c: (n_chunks - 1 - c, 0, 0)),
            ],
            scratch_shapes=[
                pltpu.VMEM((t_block, b, g3), jnp.float32),   # gx fwd (chunk)
                pltpu.VMEM((t_block, b, g3), jnp.float32),   # gx bwd (chunk)
                pltpu.VMEM((b, h_size), jnp.float32),        # h fwd carry
                pltpu.VMEM((b, h_size), jnp.float32),        # h bwd carry
            ],
        ),
        compiler_params=pltpu.CompilerParams(
            dimension_semantics=("arbitrary",),              # sequential carry
            vmem_limit_bytes=32 * 1024 * 1024),
    )(x_tm, x_tm, w_ih, w_hh, b_gx, b_hn)


# ---------------------------------------------------------------------------
# Encoder wrapper (matches the PyTorch module's forward semantics)
# ---------------------------------------------------------------------------
class EncoderPallas:
    """JAX/Pallas equivalent of the PyTorch Encoder (bi-GRU, batch_first)."""

    def __init__(self, input_size, h_size, drop_prob=0.0, key=None, time_block=None):
        self.input_size = input_size
        self.h_size = h_size
        self.out_size = 2 * h_size
        self.drop_prob = drop_prob      # p=0 -> identity (inference semantics)
        self.time_block = time_block    # optional override (testing / tuning)

        if key is None:
            key = jax.random.PRNGKey(42)
        k = 1.0 / np.sqrt(h_size)
        keys = jax.random.split(key, 8)

        def u(kk, shape):
            return jax.random.uniform(kk, shape, jnp.float32, -k, k)

        g3 = 3 * h_size
        # Pre-transposed weights: (I, 3H) input projection, (H, 3H) recurrent.
        self.w_ih_f_t = u(keys[0], (input_size, g3))
        self.w_hh_f_t = u(keys[1], (h_size, g3))
        self.b_ih_f = u(keys[2], (1, g3))
        self.b_hh_f = u(keys[3], (1, g3))
        self.w_ih_b_t = u(keys[4], (input_size, g3))
        self.w_hh_b_t = u(keys[5], (h_size, g3))
        self.b_ih_b = u(keys[6], (1, g3))
        self.b_hh_b = u(keys[7], (1, g3))

        # Direction-stacked params for the fused kernel.
        self.w_ih = jnp.stack([self.w_ih_f_t, self.w_ih_b_t], axis=0)   # (2, I, 3H)
        self.w_hh = jnp.stack([self.w_hh_f_t, self.w_hh_b_t], axis=0)   # (2, H, 3H)
        # Fold the r/z thirds of b_hh into the projection bias (they add linearly
        # before sigmoid); only the n-part of b_hh must stay inside r * (.).
        zeros_h = jnp.zeros((1, h_size), jnp.float32)
        b_gx_f = self.b_ih_f + jnp.concatenate(
            [self.b_hh_f[:, :2 * h_size], zeros_h], axis=1)
        b_gx_b = self.b_ih_b + jnp.concatenate(
            [self.b_hh_b[:, :2 * h_size], zeros_h], axis=1)
        self.b_gx = jnp.stack([b_gx_f, b_gx_b], axis=0)                 # (2, 1, 3H)
        self.b_hn = jnp.stack([self.b_hh_f[:, 2 * h_size:],
                               self.b_hh_b[:, 2 * h_size:]], axis=0)    # (2, 1, H)

    def __call__(self, x):
        # x: (batch, seq, input_size)  ->  (batch, seq, 2*h_size)
        # One XLA transpose to time-major so all in-kernel per-step tiles are dense.
        x_tm = jnp.transpose(x, (1, 0, 2))                              # (S, B, I)
        out_f, out_b = bigru_fused(x_tm, self.w_ih, self.w_hh, self.b_gx,
                                   self.b_hn, self.h_size,
                                   time_block=self.time_block)
        # Single fused concat+transpose copy back to batch-first (B, S, 2H).
        hiddens = jnp.transpose(jnp.concatenate([out_f, out_b], axis=-1), (1, 0, 2))
        # Dropout(p=0) is identity.
        # TODO(synk): train-mode dropout (p>0) would need pltpu.prng_* in a kernel.
        return hiddens


# ---------------------------------------------------------------------------
# Pure-JAX reference (lax.scan) for correctness checking
# ---------------------------------------------------------------------------
def _gru_ref_direction(x, w_ih_t, w_hh_t, b_ih, b_hh, h_size, reverse):
    b, s, i = x.shape
    xs = jnp.transpose(x, (1, 0, 2))     # (S, B, I)
    if reverse:
        xs = xs[::-1]
    h0 = jnp.zeros((b, h_size), jnp.float32)

    def step(h, x_t):
        gx = x_t @ w_ih_t + b_ih
        gh = h @ w_hh_t + b_hh
        r = jax.nn.sigmoid(gx[:, :h_size] + gh[:, :h_size])
        z = jax.nn.sigmoid(gx[:, h_size:2 * h_size] + gh[:, h_size:2 * h_size])
        n = jnp.tanh(gx[:, 2 * h_size:] + r * gh[:, 2 * h_size:])
        h_new = (1.0 - z) * n + z * h
        return h_new, h_new

    _, hs = jax.lax.scan(step, h0, xs)
    if reverse:
        hs = hs[::-1]
    return jnp.transpose(hs, (1, 0, 2))  # (B, S, H)


def _check(enc, x):
    out = jax.block_until_ready(enc(x))
    ref_f = _gru_ref_direction(x, enc.w_ih_f_t, enc.w_hh_f_t, enc.b_ih_f,
                               enc.b_hh_f, enc.h_size, reverse=False)
    ref_b = _gru_ref_direction(x, enc.w_ih_b_t, enc.w_hh_b_t, enc.b_ih_b,
                               enc.b_hh_b, enc.h_size, reverse=True)
    ref = jnp.concatenate([ref_f, ref_b], axis=-1)
    assert out.shape == ref.shape
    np.testing.assert_allclose(np.asarray(out), np.asarray(ref),
                               atol=1e-4, rtol=1e-4)


if __name__ == "__main__":
    # Case 1: single-chunk path.
    batch, seq, input_size, h_size = 2, 8, 32, 32
    x1 = jax.random.normal(jax.random.PRNGKey(0),
                           (batch, seq, input_size), jnp.float32)
    enc1 = EncoderPallas(input_size, h_size, drop_prob=0.0,
                         key=jax.random.PRNGKey(1))
    _check(enc1, x1)

    # Case 2: multi-chunk path (forced T_BLOCK=4 over seq=16) exercises the hidden-state
    # carry across chunks and the reversed-chunk backward mapping.
    x2 = jax.random.normal(jax.random.PRNGKey(2),
                           (batch, 16, input_size), jnp.float32)
    enc2 = EncoderPallas(input_size, h_size, drop_prob=0.0,
                         key=jax.random.PRNGKey(3), time_block=4)
    _check(enc2, x2)

    print("KERNEL_OK")
</pallas_src>

<mosaic_0001>
module attributes {stable_mosaic.version = 11 : i64} {
  func.func @_bigru_fused_kernel(%arg0: i32, %arg1: memref<8x2x32xf32, #tpu.memory_space<vmem>>, %arg2: memref<8x2x32xf32, #tpu.memory_space<vmem>>, %arg3: memref<2x32x96xf32, #tpu.memory_space<vmem>>, %arg4: memref<2x32x96xf32, #tpu.memory_space<vmem>>, %arg5: memref<2x1x96xf32, #tpu.memory_space<vmem>>, %arg6: memref<2x1x32xf32, #tpu.memory_space<vmem>>, %arg7: memref<8x2x32xf32, #tpu.memory_space<vmem>>, %arg8: memref<8x2x32xf32, #tpu.memory_space<vmem>>, %arg9: memref<8x2x96xf32, #tpu.memory_space<vmem>>, %arg10: memref<8x2x96xf32, #tpu.memory_space<vmem>>, %arg11: memref<2x32xf32, #tpu.memory_space<vmem>>, %arg12: memref<2x32xf32, #tpu.memory_space<vmem>>) attributes {dimension_semantics = [#tpu.dimension_semantics<arbitrary>], iteration_bounds = array<i64: 1>, scalar_prefetch = 0 : i64, scratch_operands = 4 : i64, tpu.core_type = #tpu.core_type<tc>, window_params = [{transform_indices = @transform_0, window_bounds = array<i64: 8, 2, 32>}, {transform_indices = @transform_1, window_bounds = array<i64: 8, 2, 32>}, {pipeline_mode = #tpu.pipeline_mode<synchronous>, transform_indices = @transform_2, window_bounds = array<i64: 2, 32, 96>}, {pipeline_mode = #tpu.pipeline_mode<synchronous>, transform_indices = @transform_3, window_bounds = array<i64: 2, 32, 96>}, {pipeline_mode = #tpu.pipeline_mode<synchronous>, transform_indices = @transform_4, window_bounds = array<i64: 2, 1, 96>}, {pipeline_mode = #tpu.pipeline_mode<synchronous>, transform_indices = @transform_5, window_bounds = array<i64: 2, 1, 32>}, {transform_indices = @transform_6, window_bounds = array<i64: 8, 2, 32>}, {transform_indices = @transform_7, window_bounds = array<i64: 8, 2, 32>}]} {
    %c0_i32 = arith.constant 0 : i32
    %0 = arith.cmpi eq, %arg0, %c0_i32 : i32
    %1 = arith.extui %0 : i1 to i32
    %c0_i32_0 = arith.constant 0 : i32
    %2 = arith.cmpi ne, %1, %c0_i32_0 : i32
    scf.if %2 {
      %cst_198 = arith.constant 0.000000e+00 : f32
      %569 = vector.broadcast %cst_198 : f32 to vector<2x32xf32>
      %c0_199 = arith.constant 0 : index
      %c0_200 = arith.constant 0 : index
      %570 = vector.load %arg11[%c0_199, %c0_200] : memref<2x32xf32, #tpu.memory_space<vmem>>, vector<2x32xf32>
      tpu.vector_store %arg11[%c0_199, %c0_200], %569 {strides = array<i32>} : memref<2x32xf32, #tpu.memory_space<vmem>>, vector<2x32xf32>,
      %cst_201 = arith.constant 0.000000e+00 : f32
      %571 = vector.broadcast %cst_201 : f32 to vector<2x32xf32>
      %c0_202 = arith.constant 0 : index
      %c0_203 = arith.constant 0 : index
      %572 = vector.load %arg12[%c0_202, %c0_203] : memref<2x32xf32, #tpu.memory_space<vmem>>, vector<2x32xf32>
      tpu.vector_store %arg12[%c0_202, %c0_203], %571 {strides = array<i32>} : memref<2x32xf32, #tpu.memory_space<vmem>>, vector<2x32xf32>,
    } else {
    }
    %c0 = arith.constant 0 : index
    %c0_1 = arith.constant 0 : index
    %c0_2 = arith.constant 0 : index
    %3 = vector.load %arg1[%c0, %c0_1, %c0_2] : memref<8x2x32xf32, #tpu.memory_space<vmem>>, vector<8x2x32xf32>
    %4 = vector.shape_cast %3 : vector<8x2x32xf32> to vector<16x32xf32>
    %c0_3 = arith.constant 0 : index
    %c0_4 = arith.constant 0 : index
    %c0_5 = arith.constant 0 : index
    %5 = vector.load %arg2[%c0_3, %c0_4, %c0_5] : memref<8x2x32xf32, #tpu.memory_space<vmem>>, vector<8x2x32xf32>
    %6 = vector.shape_cast %5 : vector<8x2x32xf32> to vector<16x32xf32>
    %c0_6 = arith.constant 0 : index
    %c0_7 = arith.constant 0 : index
    %c0_8 = arith.constant 0 : index
    %7 = vector.load %arg3[%c0_6, %c0_7, %c0_8] : memref<2x32x96xf32, #tpu.memory_space<vmem>>, vector<1x32x96xf32>
    %8 = vector.shape_cast %7 : vector<1x32x96xf32> to vector<32x96xf32>
    %cst = arith.constant dense<0.000000e+00> : vector<16x96xf32>
    %9 = tpu.matmul %4, %8, %cst {dimension_numbers = #tpu.dot_dimension_numbers<[1], [0], [0], [1], [0, 0, 1, 1], [], []>} : vector<16x32xf32>, vector<32x96xf32>, vector<16x96xf32> -> vector<16x96xf32>
    %c0_9 = arith.constant 0 : index
    %c0_10 = arith.constant 0 : index
    %c0_11 = arith.constant 0 : index
    %10 = vector.load %arg5[%c0_9, %c0_10, %c0_11] : memref<2x1x96xf32, #tpu.memory_space<vmem>>, vector<1x1x96xf32>
    %11 = vector.shape_cast %10 : vector<1x1x96xf32> to vector<1x96xf32>
    %12 = vector.broadcast %11 : vector<1x96xf32> to vector<16x96xf32>
    %13 = arith.addf %9, %12 : vector<16x96xf32>
    %14 = vector.shape_cast %13 : vector<16x96xf32> to vector<8x2x96xf32>
    %c0_12 = arith.constant 0 : index
    %c0_13 = arith.constant 0 : index
    %c0_14 = arith.constant 0 : index
    %15 = vector.load %arg9[%c0_12, %c0_13, %c0_14] : memref<8x2x96xf32, #tpu.memory_space<vmem>>, vector<8x2x96xf32>
    tpu.vector_store %arg9[%c0_12, %c0_13, %c0_14], %14 {strides = array<i32>} : memref<8x2x96xf32, #tpu.memory_space<vmem>>, vector<8x2x96xf32>,
    %c1 = arith.constant 1 : index
    %c0_15 = arith.constant 0 : index
    %c0_16 = arith.constant 0 : index
    %16 = vector.load %arg3[%c1, %c0_15, %c0_16] : memref<2x32x96xf32, #tpu.memory_space<vmem>>, vector<1x32x96xf32>
    %17 = vector.shape_cast %16 : vector<1x32x96xf32> to vector<32x96xf32>
    %cst_17 = arith.constant dense<0.000000e+00> : vector<16x96xf32>
    %18 = tpu.matmul %6, %17, %cst_17 {dimension_numbers = #tpu.dot_dimension_numbers<[1], [0], [0], [1], [0, 0, 1, 1], [], []>} : vector<16x32xf32>, vector<32x96xf32>, vector<16x96xf32> -> vector<16x96xf32>
    %c1_18 = arith.constant 1 : index
    %c0_19 = arith.constant 0 : index
    %c0_20 = arith.constant 0 : index
    %19 = vector.load %arg5[%c1_18, %c0_19, %c0_20] : memref<2x1x96xf32, #tpu.memory_space<vmem>>, vector<1x1x96xf32>
    %20 = vector.shape_cast %19 : vector<1x1x96xf32> to vector<1x96xf32>
    %21 = vector.broadcast %20 : vector<1x96xf32> to vector<16x96xf32>
    %22 = arith.addf %18, %21 : vector<16x96xf32>
    %23 = vector.shape_cast %22 : vector<16x96xf32> to vector<8x2x96xf32>
    %c0_21 = arith.constant 0 : index
    %c0_22 = arith.constant 0 : index
    %c0_23 = arith.constant 0 : index
    %24 = vector.load %arg10[%c0_21, %c0_22, %c0_23] : memref<8x2x96xf32, #tpu.memory_space<vmem>>, vector<8x2x96xf32>
    tpu.vector_store %arg10[%c0_21, %c0_22, %c0_23], %23 {strides = array<i32>} : memref<8x2x96xf32, #tpu.memory_space<vmem>>, vector<8x2x96xf32>,
    %c0_24 = arith.constant 0 : index
    %c0_25 = arith.constant 0 : index
    %c0_26 = arith.constant 0 : index
    %25 = vector.load %arg4[%c0_24, %c0_25, %c0_26] : memref<2x32x96xf32, #tpu.memory_space<vmem>>, vector<1x32x96xf32>
    %26 = vector.shape_cast %25 : vector<1x32x96xf32> to vector<32x96xf32>
    %c1_27 = arith.constant 1 : index
    %c0_28 = arith.constant 0 : index
    %c0_29 = arith.constant 0 : index
    %27 = vector.load %arg4[%c1_27, %c0_28, %c0_29] : memref<2x32x96xf32, #tpu.memory_space<vmem>>, vector<1x32x96xf32>
    %28 = vector.shape_cast %27 : vector<1x32x96xf32> to vector<32x96xf32>
    %c0_30 = arith.constant 0 : index
    %c0_31 = arith.constant 0 : index
    %c0_32 = arith.constant 0 : index
    %29 = vector.load %arg6[%c0_30, %c0_31, %c0_32] : memref<2x1x32xf32, #tpu.memory_space<vmem>>, vector<1x1x32xf32>
    %30 = vector.shape_cast %29 : vector<1x1x32xf32> to vector<1x32xf32>
    %31 = vector.shape_cast %30 : vector<1x32xf32> to vector<1x32xf32>
    %32 = vector.broadcast %31 : vector<1x32xf32> to vector<2x32xf32>
    %c1_33 = arith.constant 1 : index
    %c0_34 = arith.constant 0 : index
    %c0_35 = arith.constant 0 : index
    %33 = vector.load %arg6[%c1_33, %c0_34, %c0_35] : memref<2x1x32xf32, #tpu.memory_space<vmem>>, vector<1x1x32xf32>
    %34 = vector.shape_cast %33 : vector<1x1x32xf32> to vector<1x32xf32>
    %35 = vector.shape_cast %34 : vector<1x32xf32> to vector<1x32xf32>
    %36 = vector.broadcast %35 : vector<1x32xf32> to vector<2x32xf32>
    %c0_36 = arith.constant 0 : index
    %c0_37 = arith.constant 0 : index
    %37 = vector.load %arg11[%c0_36, %c0_37] : memref<2x32xf32, #tpu.memory_space<vmem>>, vector<2x32xf32>
    %c0_38 = arith.constant 0 : index
    %c0_39 = arith.constant 0 : index
    %38 = vector.load %arg12[%c0_38, %c0_39] : memref<2x32xf32, #tpu.memory_space<vmem>>, vector<2x32xf32>
    %cst_40 = arith.constant dense<0.000000e+00> : vector<2x96xf32>
    %39 = tpu.matmul %37, %26, %cst_40 {dimension_numbers = #tpu.dot_dimension_numbers<[1], [0], [0], [1], [0, 0, 1, 1], [], []>} : vector<2x32xf32>, vector<32x96xf32>, vector<2x96xf32> -> vector<2x96xf32>
    %cst_41 = arith.constant dense<0.000000e+00> : vector<2x96xf32>
    %40 = tpu.matmul %38, %28, %cst_41 {dimension_numbers = #tpu.dot_dimension_numbers<[1], [0], [0], [1], [0, 0, 1, 1], [], []>} : vector<2x32xf32>, vector<32x96xf32>, vector<2x96xf32> -> vector<2x96xf32>
    %c0_42 = arith.constant 0 : index
    %c0_43 = arith.constant 0 : index
    %c0_44 = arith.constant 0 : index
    %41 = vector.load %arg9[%c0_42, %c0_43, %c0_44] : memref<8x2x96xf32, #tpu.memory_space<vmem>>, vector<1x2x96xf32>
    %42 = vector.shape_cast %41 : vector<1x2x96xf32> to vector<2x96xf32>
    %c7 = arith.constant 7 : index
    %c0_45 = arith.constant 0 : index
    %c0_46 = arith.constant 0 : index
    %43 = vector.load %arg10[%c7, %c0_45, %c0_46] : memref<8x2x96xf32, #tpu.memory_space<vmem>>, vector<1x2x96xf32>
    %44 = vector.shape_cast %43 : vector<1x2x96xf32> to vector<2x96xf32>
    %45 = vector.extract_strided_slice %42 {offsets = [0, 0], sizes = [2, 32], strides = [1, 1]} : vector<2x96xf32> to vector<2x32xf32>
    %46 = vector.extract_strided_slice %39 {offsets = [0, 0], sizes = [2, 32], strides = [1, 1]} : vector<2x96xf32> to vector<2x32xf32>
    %47 = arith.addf %45, %46 : vector<2x32xf32>
    %48 = arith.negf %47 : vector<2x32xf32>
    %49 = math.exp %48 : vector<2x32xf32>
    %cst_47 = arith.constant 1.000000e+00 : f32
    %50 = vector.broadcast %cst_47 : f32 to vector<2x32xf32>
    %51 = arith.addf %50, %49 : vector<2x32xf32>
    %52 = arith.divf %50, %51 : vector<2x32xf32>
    %53 = vector.extract_strided_slice %42 {offsets = [0, 32], sizes = [2, 32], strides = [1, 1]} : vector<2x96xf32> to vector<2x32xf32>
    %54 = vector.extract_strided_slice %39 {offsets = [0, 32], sizes = [2, 32], strides = [1, 1]} : vector<2x96xf32> to vector<2x32xf32>
    %55 = arith.addf %53, %54 : vector<2x32xf32>
    %56 = arith.negf %55 : vector<2x32xf32>
    %57 = math.exp %56 : vector<2x32xf32>
    %cst_48 = arith.constant 1.000000e+00 : f32
    %58 = vector.broadcast %cst_48 : f32 to vector<2x32xf32>
    %59 = arith.addf %58, %57 : vector<2x32xf32>
    %60 = arith.divf %58, %59 : vector<2x32xf32>
    %61 = vector.extract_strided_slice %42 {offsets = [0, 64], sizes = [2, 32], strides = [1, 1]} : vector<2x96xf32> to vector<2x32xf32>
    %62 = vector.extract_strided_slice %39 {offsets = [0, 64], sizes = [2, 32], strides = [1, 1]} : vector<2x96xf32> to vector<2x32xf32>
    %63 = arith.addf %62, %32 : vector<2x32xf32>
    %64 = arith.mulf %52, %63 : vector<2x32xf32>
    %65 = arith.addf %61, %64 : vector<2x32xf32>
    %66 = math.tanh %65 : vector<2x32xf32>
    %cst_49 = arith.constant 1.000000e+00 : f32
    %67 = vector.broadcast %cst_49 : f32 to vector<2x32xf32>
    %68 = arith.subf %67, %60 : vector<2x32xf32>
    %69 = arith.mulf %68, %66 : vector<2x32xf32>
    %70 = arith.mulf %60, %37 : vector<2x32xf32>
    %71 = arith.addf %69, %70 : vector<2x32xf32>
    %c0_50 = arith.constant 0 : index
    %c0_51 = arith.constant 0 : index
    %c0_52 = arith.constant 0 : index
    %72 = vector.load %arg7[%c0_50, %c0_51, %c0_52] : memref<8x2x32xf32, #tpu.memory_space<vmem>>, vector<1x2x32xf32>
    %73 = vector.shape_cast %72 : vector<1x2x32xf32> to vector<2x32xf32>
    %74 = vector.shape_cast %71 : vector<2x32xf32> to vector<1x2x32xf32>
    tpu.vector_store %arg7[%c0_50, %c0_51, %c0_52], %74 {strides = array<i32>} : memref<8x2x32xf32, #tpu.memory_space<vmem>>, vector<1x2x32xf32>,
    %75 = vector.extract_strided_slice %44 {offsets = [0, 0], sizes = [2, 32], strides = [1, 1]} : vector<2x96xf32> to vector<2x32xf32>
    %76 = vector.extract_strided_slice %40 {offsets = [0, 0], sizes = [2, 32], strides = [1, 1]} : vector<2x96xf32> to vector<2x32xf32>
    %77 = arith.addf %75, %76 : vector<2x32xf32>
    %78 = arith.negf %77 : vector<2x32xf32>
    %79 = math.exp %78 : vector<2x32xf32>
    %cst_53 = arith.constant 1.000000e+00 : f32
    %80 = vector.broadcast %cst_53 : f32 to vector<2x32xf32>
    %81 = arith.addf %80, %79 : vector<2x32xf32>
    %82 = arith.divf %80, %81 : vector<2x32xf32>
    %83 = vector.extract_strided_slice %44 {offsets = [0, 32], sizes = [2, 32], strides = [1, 1]} : vector<2x96xf32> to vector<2x32xf32>
    %84 = vector.extract_strided_slice %40 {offsets = [0, 32], sizes = [2, 32], strides = [1, 1]} : vector<2x96xf32> to vector<2x32xf32>
    %85 = arith.addf %83, %84 : vector<2x32xf32>
    %86 = arith.negf %85 : vector<2x32xf32>
    %87 = math.exp %86 : vector<2x32xf32>
    %cst_54 = arith.constant 1.000000e+00 : f32
    %88 = vector.broadcast %cst_54 : f32 to vector<2x32xf32>
    %89 = arith.addf %88, %87 : vector<2x32xf32>
    %90 = arith.divf %88, %89 : vector<2x32xf32>
    %91 = vector.extract_strided_slice %44 {offsets = [0, 64], sizes = [2, 32], strides = [1, 1]} : vector<2x96xf32> to vector<2x32xf32>
    %92 = vector.extract_strided_slice %40 {offsets = [0, 64], sizes = [2, 32], strides = [1, 1]} : vector<2x96xf32> to vector<2x32xf32>
    %93 = arith.addf %92, %36 : vector<2x32xf32>
    %94 = arith.mulf %82, %93 : vector<2x32xf32>
    %95 = arith.addf %91, %94 : vector<2x32xf32>
    %96 = math.tanh %95 : vector<2x32xf32>
    %cst_55 = arith.constant 1.000000e+00 : f32
    %97 = vector.broadcast %cst_55 : f32 to vector<2x32xf32>
    %98 = arith.subf %97, %90 : vector<2x32xf32>
    %99 = arith.mulf %98, %96 : vector<2x32xf32>
    %100 = arith.mulf %90, %38 : vector<2x32xf32>
    %101 = arith.addf %99, %100 : vector<2x32xf32>
    %c7_56 = arith.constant 7 : index
    %c0_57 = arith.constant 0 : index
    %c0_58 = arith.constant 0 : index
    %102 = vector.load %arg8[%c7_56, %c0_57, %c0_58] : memref<8x2x32xf32, #tpu.memory_space<vmem>>, vector<1x2x32xf32>
    %103 = vector.shape_cast %102 : vector<1x2x32xf32> to vector<2x32xf32>
    %104 = vector.shape_cast %101 : vector<2x32xf32> to vector<1x2x32xf32>
    tpu.vector_store %arg8[%c7_56, %c0_57, %c0_58], %104 {strides = array<i32>} : memref<8x2x32xf32, #tpu.memory_space<vmem>>, vector<1x2x32xf32>,
    %cst_59 = arith.constant dense<0.000000e+00> : vector<2x96xf32>
    %105 = tpu.matmul %71, %26, %cst_59 {dimension_numbers = #tpu.dot_dimension_numbers<[1], [0], [0], [1], [0, 0, 1, 1], [], []>} : vector<2x32xf32>, vector<32x96xf32>, vector<2x96xf32> -> vector<2x96xf32>
    %cst_60 = arith.constant dense<0.000000e+00> : vector<2x96xf32>
    %106 = tpu.matmul %101, %28, %cst_60 {dimension_numbers = #tpu.dot_dimension_numbers<[1], [0], [0], [1], [0, 0, 1, 1], [], []>} : vector<2x32xf32>, vector<32x96xf32>, vector<2x96xf32> -> vector<2x96xf32>
    %c1_61 = arith.constant 1 : index
    %c0_62 = arith.constant 0 : index
    %c0_63 = arith.constant 0 : index
    %107 = vector.load %arg9[%c1_61, %c0_62, %c0_63] : memref<8x2x96xf32, #tpu.memory_space<vmem>>, vector<1x2x96xf32>
    %108 = vector.shape_cast %107 : vector<1x2x96xf32> to vector<2x96xf32>
    %c6 = arith.constant 6 : index
    %c0_64 = arith.constant 0 : index
    %c0_65 = arith.constant 0 : index
    %109 = vector.load %arg10[%c6, %c0_64, %c0_65] : memref<8x2x96xf32, #tpu.memory_space<vmem>>, vector<1x2x96xf32>
    %110 = vector.shape_cast %109 : vector<1x2x96xf32> to vector<2x96xf32>
    %111 = vector.extract_strided_slice %108 {offsets = [0, 0], sizes = [2, 32], strides = [1, 1]} : vector<2x96xf32> to vector<2x32xf32>
    %112 = vector.extract_strided_slice %105 {offsets = [0, 0], sizes = [2, 32], strides = [1, 1]} : vector<2x96xf32> to vector<2x32xf32>
    %113 = arith.addf %111, %112 : vector<2x32xf32>
    %114 = arith.negf %113 : vector<2x32xf32>
    %115 = math.exp %114 : vector<2x32xf32>
    %cst_66 = arith.constant 1.000000e+00 : f32
    %116 = vector.broadcast %cst_66 : f32 to vector<2x32xf32>
    %117 = arith.addf %116, %115 : vector<2x32xf32>
    %118 = arith.divf %116, %117 : vector<2x32xf32>
    %119 = vector.extract_strided_slice %108 {offsets = [0, 32], sizes = [2, 32], strides = [1, 1]} : vector<2x96xf32> to vector<2x32xf32>
    %120 = vector.extract_strided_slice %105 {offsets = [0, 32], sizes = [2, 32], strides = [1, 1]} : vector<2x96xf32> to vector<2x32xf32>
    %121 = arith.addf %119, %120 : vector<2x32xf32>
    %122 = arith.negf %121 : vector<2x32xf32>
    %123 = math.exp %122 : vector<2x32xf32>
    %cst_67 = arith.constant 1.000000e+00 : f32
    %124 = vector.broadcast %cst_67 : f32 to vector<2x32xf32>
    %125 = arith.addf %124, %123 : vector<2x32xf32>
    %126 = arith.divf %124, %125 : vector<2x32xf32>
    %127 = vector.extract_strided_slice %108 {offsets = [0, 64], sizes = [2, 32], strides = [1, 1]} : vector<2x96xf32> to vector<2x32xf32>
    %128 = vector.extract_strided_slice %105 {offsets = [0, 64], sizes = [2, 32], strides = [1, 1]} : vector<2x96xf32> to vector<2x32xf32>
    %129 = arith.addf %128, %32 : vector<2x32xf32>
    %130 = arith.mulf %118, %129 : vector<2x32xf32>
    %131 = arith.addf %127, %130 : vector<2x32xf32>
    %132 = math.tanh %131 : vector<2x32xf32>
    %cst_68 = arith.constant 1.000000e+00 : f32
    %133 = vector.broadcast %cst_68 : f32 to vector<2x32xf32>
    %134 = arith.subf %133, %126 : vector<2x32xf32>
    %135 = arith.mulf %134, %132 : vector<2x32xf32>
    %136 = arith.mulf %126, %71 : vector<2x32xf32>
    %137 = arith.addf %135, %136 : vector<2x32xf32>
    %c1_69 = arith.constant 1 : index
    %c0_70 = arith.constant 0 : index
    %c0_71 = arith.constant 0 : index
    %138 = vector.load %arg7[%c1_69, %c0_70, %c0_71] : memref<8x2x32xf32, #tpu.memory_space<vmem>>, vector<1x2x32xf32>
    %139 = vector.shape_cast %138 : vector<1x2x32xf32> to vector<2x32xf32>
    %140 = vector.shape_cast %137 : vector<2x32xf32> to vector<1x2x32xf32>
    tpu.vector_store %arg7[%c1_69, %c0_70, %c0_71], %140 {strides = array<i32>} : memref<8x2x32xf32, #tpu.memory_space<vmem>>, vector<1x2x32xf32>,
    %141 = vector.extract_strided_slice %110 {offsets = [0, 0], sizes = [2, 32], strides = [1, 1]} : vector<2x96xf32> to vector<2x32xf32>
    %142 = vector.extract_strided_slice %106 {offsets = [0, 0], sizes = [2, 32], strides = [1, 1]} : vector<2x96xf32> to vector<2x32xf32>
    %143 = arith.addf %141, %142 : vector<2x32xf32>
    %144 = arith.negf %143 : vector<2x32xf32>
    %145 = math.exp %144 : vector<2x32xf32>
    %cst_72 = arith.constant 1.000000e+00 : f32
    %146 = vector.broadcast %cst_72 : f32 to vector<2x32xf32>
    %147 = arith.addf %146, %145 : vector<2x32xf32>
    %148 = arith.divf %146, %147 : vector<2x32xf32>
    %149 = vector.extract_strided_slice %110 {offsets = [0, 32], sizes = [2, 32], strides = [1, 1]} : vector<2x96xf32> to vector<2x32xf32>
    %150 = vector.extract_strided_slice %106 {offsets = [0, 32], sizes = [2, 32], strides = [1, 1]} : vector<2x96xf32> to vector<2x32xf32>
    %151 = arith.addf %149, %150 : vector<2x32xf32>
    %152 = arith.negf %151 : vector<2x32xf32>
    %153 = math.exp %152 : vector<2x32xf32>
    %cst_73 = arith.constant 1.000000e+00 : f32
    %154 = vector.broadcast %cst_73 : f32 to vector<2x32xf32>
    %155 = arith.addf %154, %153 : vector<2x32xf32>
    %156 = arith.divf %154, %155 : vector<2x32xf32>
    %157 = vector.extract_strided_slice %110 {offsets = [0, 64], sizes = [2, 32], strides = [1, 1]} : vector<2x96xf32> to vector<2x32xf32>
    %158 = vector.extract_strided_slice %106 {offsets = [0, 64], sizes = [2, 32], strides = [1, 1]} : vector<2x96xf32> to vector<2x32xf32>
    %159 = arith.addf %158, %36 : vector<2x32xf32>
    %160 = arith.mulf %148, %159 : vector<2x32xf32>
    %161 = arith.addf %157, %160 : vector<2x32xf32>
    %162 = math.tanh %161 : vector<2x32xf32>
    %cst_74 = arith.constant 1.000000e+00 : f32
    %163 = vector.broadcast %cst_74 : f32 to vector<2x32xf32>
    %164 = arith.subf %163, %156 : vector<2x32xf32>
    %165 = arith.mulf %164, %162 : vector<2x32xf32>
    %166 = arith.mulf %156, %101 : vector<2x32xf32>
    %167 = arith.addf %165, %166 : vector<2x32xf32>
    %c6_75 = arith.constant 6 : index
    %c0_76 = arith.constant 0 : index
    %c0_77 = arith.constant 0 : index
    %168 = vector.load %arg8[%c6_75, %c0_76, %c0_77] : memref<8x2x32xf32, #tpu.memory_space<vmem>>, vector<1x2x32xf32>
    %169 = vector.shape_cast %168 : vector<1x2x32xf32> to vector<2x32xf32>
    %170 = vector.shape_cast %167 : vector<2x32xf32> to vector<1x2x32xf32>
    tpu.vector_store %arg8[%c6_75, %c0_76, %c0_77], %170 {strides = array<i32>} : memref<8x2x32xf32, #tpu.memory_space<vmem>>, vector<1x2x32xf32>,
    %cst_78 = arith.constant dense<0.000000e+00> : vector<2x96xf32>
    %171 = tpu.matmul %137, %26, %cst_78 {dimension_numbers = #tpu.dot_dimension_numbers<[1], [0], [0], [1], [0, 0, 1, 1], [], []>} : vector<2x32xf32>, vector<32x96xf32>, vector<2x96xf32> -> vector<2x96xf32>
    %cst_79 = arith.constant dense<0.000000e+00> : vector<2x96xf32>
    %172 = tpu.matmul %167, %28, %cst_79 {dimension_numbers = #tpu.dot_dimension_numbers<[1], [0], [0], [1], [0, 0, 1, 1], [], []>} : vector<2x32xf32>, vector<32x96xf32>, vector<2x96xf32> -> vector<2x96xf32>
    %c2 = arith.constant 2 : index
    %c0_80 = arith.constant 0 : index
    %c0_81 = arith.constant 0 : index
    %173 = vector.load %arg9[%c2, %c0_80, %c0_81] : memref<8x2x96xf32, #tpu.memory_space<vmem>>, vector<1x2x96xf32>
    %174 = vector.shape_cast %173 : vector<1x2x96xf32> to vector<2x96xf32>
    %c5 = arith.constant 5 : index
    %c0_82 = arith.constant 0 : index
    %c0_83 = arith.constant 0 : index
    %175 = vector.load %arg10[%c5, %c0_82, %c0_83] : memref<8x2x96xf32, #tpu.memory_space<vmem>>, vector<1x2x96xf32>
    %176 = vector.shape_cast %175 : vector<1x2x96xf32> to vector<2x96xf32>
    %177 = vector.extract_strided_slice %174 {offsets = [0, 0], sizes = [2, 32], strides = [1, 1]} : vector<2x96xf32> to vector<2x32xf32>
    %178 = vector.extract_strided_slice %171 {offsets = [0, 0], sizes = [2, 32], strides = [1, 1]} : vector<2x96xf32> to vector<2x32xf32>
    %179 = arith.addf %177, %178 : vector<2x32xf32>
    %180 = arith.negf %179 : vector<2x32xf32>
    %181 = math.exp %180 : vector<2x32xf32>
    %cst_84 = arith.constant 1.000000e+00 : f32
    %182 = vector.broadcast %cst_84 : f32 to vector<2x32xf32>
    %183 = arith.addf %182, %181 : vector<2x32xf32>
    %184 = arith.divf %182, %183 : vector<2x32xf32>
    %185 = vector.extract_strided_slice %174 {offsets = [0, 32], sizes = [2, 32], strides = [1, 1]} : vector<2x96xf32> to vector<2x32xf32>
    %186 = vector.extract_strided_slice %171 {offsets = [0, 32], sizes = [2, 32], strides = [1, 1]} : vector<2x96xf32> to vector<2x32xf32>
    %187 = arith.addf %185, %186 : vector<2x32xf32>
    %188 = arith.negf %187 : vector<2x32xf32>
    %189 = math.exp %188 : vector<2x32xf32>
    %cst_85 = arith.constant 1.000000e+00 : f32
    %190 = vector.broadcast %cst_85 : f32 to vector<2x32xf32>
    %191 = arith.addf %190, %189 : vector<2x32xf32>
    %192 = arith.divf %190, %191 : vector<2x32xf32>
    %193 = vector.extract_strided_slice %174 {offsets = [0, 64], sizes = [2, 32], strides = [1, 1]} : vector<2x96xf32> to vector<2x32xf32>
    %194 = vector.extract_strided_slice %171 {offsets = [0, 64], sizes = [2, 32], strides = [1, 1]} : vector<2x96xf32> to vector<2x32xf32>
    %195 = arith.addf %194, %32 : vector<2x32xf32>
    %196 = arith.mulf %184, %195 : vector<2x32xf32>
    %197 = arith.addf %193, %196 : vector<2x32xf32>
    %198 = math.tanh %197 : vector<2x32xf32>
    %cst_86 = arith.constant 1.000000e+00 : f32
    %199 = vector.broadcast %cst_86 : f32 to vector<2x32xf32>
    %200 = arith.subf %199, %192 : vector<2x32xf32>
    %201 = arith.mulf %200, %198 : vector<2x32xf32>
    %202 = arith.mulf %192, %137 : vector<2x32xf32>
    %203 = arith.addf %201, %202 : vector<2x32xf32>
    %c2_87 = arith.constant 2 : index
    %c0_88 = arith.constant 0 : index
    %c0_89 = arith.constant 0 : index
    %204 = vector.load %arg7[%c2_87, %c0_88, %c0_89] : memref<8x2x32xf32, #tpu.memory_space<vmem>>, vector<1x2x32xf32>
    %205 = vector.shape_cast %204 : vector<1x2x32xf32> to vector<2x32xf32>
    %206 = vector.shape_cast %203 : vector<2x32xf32> to vector<1x2x32xf32>
    tpu.vector_store %arg7[%c2_87, %c0_88, %c0_89], %206 {strides = array<i32>} : memref<8x2x32xf32, #tpu.memory_space<vmem>>, vector<1x2x32xf32>,
    %207 = vector.extract_strided_slice %176 {offsets = [0, 0], sizes = [2, 32], strides = [1, 1]} : vector<2x96xf32> to vector<2x32xf32>
    %208 = vector.extract_strided_slice %172 {offsets = [0, 0], sizes = [2, 32], strides = [1, 1]} : vector<2x96xf32> to vector<2x32xf32>
    %209 = arith.addf %207, %208 : vector<2x32xf32>
    %210 = arith.negf %209 : vector<2x32xf32>
    %211 = math.exp %210 : vector<2x32xf32>
    %cst_90 = arith.constant 1.000000e+00 : f32
    %212 = vector.broadcast %cst_90 : f32 to vector<2x32xf32>
    %213 = arith.addf %212, %211 : vector<2x32xf32>
    %214 = arith.divf %212, %213 : vector<2x32xf32>
    %215 = vector.extract_strided_slice %176 {offsets = [0, 32], sizes = [2, 32], strides = [1, 1]} : vector<2x96xf32> to vector<2x32xf32>
    %216 = vector.extract_strided_slice %172 {offsets = [0, 32], sizes = [2, 32], strides = [1, 1]} : vector<2x96xf32> to vector<2x32xf32>
    %217 = arith.addf %215, %216 : vector<2x32xf32>
    %218 = arith.negf %217 : vector<2x32xf32>
    %219 = math.exp %218 : vector<2x32xf32>
    %cst_91 = arith.constant 1.000000e+00 : f32
    %220 = vector.broadcast %cst_91 : f32 to vector<2x32xf32>
    %221 = arith.addf %220, %219 : vector<2x32xf32>
    %222 = arith.divf %220, %221 : vector<2x32xf32>
    %223 = vector.extract_strided_slice %176 {offsets = [0, 64], sizes = [2, 32], strides = [1, 1]} : vector<2x96xf32> to vector<2x32xf32>
    %224 = vector.extract_strided_slice %172 {offsets = [0, 64], sizes = [2, 32], strides = [1, 1]} : vector<2x96xf32> to vector<2x32xf32>
    %225 = arith.addf %224, %36 : vector<2x32xf32>
    %226 = arith.mulf %214, %225 : vector<2x32xf32>
    %227 = arith.addf %223, %226 : vector<2x32xf32>
    %228 = math.tanh %227 : vector<2x32xf32>
    %cst_92 = arith.constant 1.000000e+00 : f32
    %229 = vector.broadcast %cst_92 : f32 to vector<2x32xf32>
    %230 = arith.subf %229, %222 : vector<2x32xf32>
    %231 = arith.mulf %230, %228 : vector<2x32xf32>
    %232 = arith.mulf %222, %167 : vector<2x32xf32>
    %233 = arith.addf %231, %232 : vector<2x32xf32>
    %c5_93 = arith.constant 5 : index
    %c0_94 = arith.constant 0 : index
    %c0_95 = arith.constant 0 : index
    %234 = vector.load %arg8[%c5_93, %c0_94, %c0_95] : memref<8x2x32xf32, #tpu.memory_space<vmem>>, vector<1x2x32xf32>
    %235 = vector.shape_cast %234 : vector<1x2x32xf32> to vector<2x32xf32>
    %236 = vector.shape_cast %233 : vector<2x32xf32> to vector<1x2x32xf32>
    tpu.vector_store %arg8[%c5_93, %c0_94, %c0_95], %236 {strides = array<i32>} : memref<8x2x32xf32, #tpu.memory_space<vmem>>, vector<1x2x32xf32>,
    %cst_96 = arith.constant dense<0.000000e+00> : vector<2x96xf32>
    %237 = tpu.matmul %203, %26, %cst_96 {dimension_numbers = #tpu.dot_dimension_numbers<[1], [0], [0], [1], [0, 0, 1, 1], [], []>} : vector<2x32xf32>, vector<32x96xf32>, vector<2x96xf32> -> vector<2x96xf32>
    %cst_97 = arith.constant dense<0.000000e+00> : vector<2x96xf32>
    %238 = tpu.matmul %233, %28, %cst_97 {dimension_numbers = #tpu.dot_dimension_numbers<[1], [0], [0], [1], [0, 0, 1, 1], [], []>} : vector<2x32xf32>, vector<32x96xf32>, vector<2x96xf32> -> vector<2x96xf32>
    %c3 = arith.constant 3 : index
    %c0_98 = arith.constant 0 : index
    %c0_99 = arith.constant 0 : index
    %239 = vector.load %arg9[%c3, %c0_98, %c0_99] : memref<8x2x96xf32, #tpu.memory_space<vmem>>, vector<1x2x96xf32>
    %240 = vector.shape_cast %239 : vector<1x2x96xf32> to vector<2x96xf32>
    %c4 = arith.constant 4 : index
    %c0_100 = arith.constant 0 : index
    %c0_101 = arith.constant 0 : index
    %241 = vector.load %arg10[%c4, %c0_100, %c0_101] : memref<8x2x96xf32, #tpu.memory_space<vmem>>, vector<1x2x96xf32>
    %242 = vector.shape_cast %241 : vector<1x2x96xf32> to vector<2x96xf32>
    %243 = vector.extract_strided_slice %240 {offsets = [0, 0], sizes = [2, 32], strides = [1, 1]} : vector<2x96xf32> to vector<2x32xf32>
    %244 = vector.extract_strided_slice %237 {offsets = [0, 0], sizes = [2, 32], strides = [1, 1]} : vector<2x96xf32> to vector<2x32xf32>
    %245 = arith.addf %243, %244 : vector<2x32xf32>
    %246 = arith.negf %245 : vector<2x32xf32>
    %247 = math.exp %246 : vector<2x32xf32>
    %cst_102 = arith.constant 1.000000e+00 : f32
    %248 = vector.broadcast %cst_102 : f32 to vector<2x32xf32>
    %249 = arith.addf %248, %247 : vector<2x32xf32>
    %250 = arith.divf %248, %249 : vector<2x32xf32>
    %251 = vector.extract_strided_slice %240 {offsets = [0, 32], sizes = [2, 32], strides = [1, 1]} : vector<2x96xf32> to vector<2x32xf32>
    %252 = vector.extract_strided_slice %237 {offsets = [0, 32], sizes = [2, 32], strides = [1, 1]} : vector<2x96xf32> to vector<2x32xf32>
    %253 = arith.addf %251, %252 : vector<2x32xf32>
    %254 = arith.negf %253 : vector<2x32xf32>
    %255 = math.exp %254 : vector<2x32xf32>
    %cst_103 = arith.constant 1.000000e+00 : f32
    %256 = vector.broadcast %cst_103 : f32 to vector<2x32xf32>
    %257 = arith.addf %256, %255 : vector<2x32xf32>
    %258 = arith.divf %256, %257 : vector<2x32xf32>
    %259 = vector.extract_strided_slice %240 {offsets = [0, 64], sizes = [2, 32], strides = [1, 1]} : vector<2x96xf32> to vector<2x32xf32>
    %260 = vector.extract_strided_slice %237 {offsets = [0, 64], sizes = [2, 32], strides = [1, 1]} : vector<2x96xf32> to vector<2x32xf32>
    %261 = arith.addf %260, %32 : vector<2x32xf32>
    %262 = arith.mulf %250, %261 : vector<2x32xf32>
    %263 = arith.addf %259, %262 : vector<2x32xf32>
    %264 = math.tanh %263 : vector<2x32xf32>
    %cst_104 = arith.constant 1.000000e+00 : f32
    %265 = vector.broadcast %cst_104 : f32 to vector<2x32xf32>
    %266 = arith.subf %265, %258 : vector<2x32xf32>
    %267 = arith.mulf %266, %264 : vector<2x32xf32>
    %268 = arith.mulf %258, %203 : vector<2x32xf32>
    %269 = arith.addf %267, %268 : vector<2x32xf32>
    %c3_105 = arith.constant 3 : index
    %c0_106 = arith.constant 0 : index
    %c0_107 = arith.constant 0 : index
    %270 = vector.load %arg7[%c3_105, %c0_106, %c0_107] : memref<8x2x32xf32, #tpu.memory_space<vmem>>, vector<1x2x32xf32>
    %271 = vector.shape_cast %270 : vector<1x2x32xf32> to vector<2x32xf32>
    %272 = vector.shape_cast %269 : vector<2x32xf32> to vector<1x2x32xf32>
    tpu.vector_store %arg7[%c3_105, %c0_106, %c0_107], %272 {strides = array<i32>} : memref<8x2x32xf32, #tpu.memory_space<vmem>>, vector<1x2x32xf32>,
    %273 = vector.extract_strided_slice %242 {offsets = [0, 0], sizes = [2, 32], strides = [1, 1]} : vector<2x96xf32> to vector<2x32xf32>
    %274 = vector.extract_strided_slice %238 {offsets = [0, 0], sizes = [2, 32], strides = [1, 1]} : vector<2x96xf32> to vector<2x32xf32>
    %275 = arith.addf %273, %274 : vector<2x32xf32>
    %276 = arith.negf %275 : vector<2x32xf32>
    %277 = math.exp %276 : vector<2x32xf32>
    %cst_108 = arith.constant 1.000000e+00 : f32
    %278 = vector.broadcast %cst_108 : f32 to vector<2x32xf32>
    %279 = arith.addf %278, %277 : vector<2x32xf32>
    %280 = arith.divf %278, %279 : vector<2x32xf32>
    %281 = vector.extract_strided_slice %242 {offsets = [0, 32], sizes = [2, 32], strides = [1, 1]} : vector<2x96xf32> to vector<2x32xf32>
    %282 = vector.extract_strided_slice %238 {offsets = [0, 32], sizes = [2, 32], strides = [1, 1]} : vector<2x96xf32> to vector<2x32xf32>
    %283 = arith.addf %281, %282 : vector<2x32xf32>
    %284 = arith.negf %283 : vector<2x32xf32>
    %285 = math.exp %284 : vector<2x32xf32>
    %cst_109 = arith.constant 1.000000e+00 : f32
    %286 = vector.broadcast %cst_109 : f32 to vector<2x32xf32>
    %287 = arith.addf %286, %285 : vector<2x32xf32>
    %288 = arith.divf %286, %287 : vector<2x32xf32>
    %289 = vector.extract_strided_slice %242 {offsets = [0, 64], sizes = [2, 32], strides = [1, 1]} : vector<2x96xf32> to vector<2x32xf32>
    %290 = vector.extract_strided_slice %238 {offsets = [0, 64], sizes = [2, 32], strides = [1, 1]} : vector<2x96xf32> to vector<2x32xf32>
    %291 = arith.addf %290, %36 : vector<2x32xf32>
    %292 = arith.mulf %280, %291 : vector<2x32xf32>
    %293 = arith.addf %289, %292 : vector<2x32xf32>
    %294 = math.tanh %293 : vector<2x32xf32>
    %cst_110 = arith.constant 1.000000e+00 : f32
    %295 = vector.broadcast %cst_110 : f32 to vector<2x32xf32>
    %296 = arith.subf %295, %288 : vector<2x32xf32>
    %297 = arith.mulf %296, %294 : vector<2x32xf32>
    %298 = arith.mulf %288, %233 : vector<2x32xf32>
    %299 = arith.addf %297, %298 : vector<2x32xf32>
    %c4_111 = arith.constant 4 : index
    %c0_112 = arith.constant 0 : index
    %c0_113 = arith.constant 0 : index
    %300 = vector.load %arg8[%c4_111, %c0_112, %c0_113] : memref<8x2x32xf32, #tpu.memory_space<vmem>>, vector<1x2x32xf32>
    %301 = vector.shape_cast %300 : vector<1x2x32xf32> to vector<2x32xf32>
    %302 = vector.shape_cast %299 : vector<2x32xf32> to vector<1x2x32xf32>
    tpu.vector_store %arg8[%c4_111, %c0_112, %c0_113], %302 {strides = array<i32>} : memref<8x2x32xf32, #tpu.memory_space<vmem>>, vector<1x2x32xf32>,
    %cst_114 = arith.constant dense<0.000000e+00> : vector<2x96xf32>
    %303 = tpu.matmul %269, %26, %cst_114 {dimension_numbers = #tpu.dot_dimension_numbers<[1], [0], [0], [1], [0, 0, 1, 1], [], []>} : vector<2x32xf32>, vector<32x96xf32>, vector<2x96xf32> -> vector<2x96xf32>
    %cst_115 = arith.constant dense<0.000000e+00> : vector<2x96xf32>
    %304 = tpu.matmul %299, %28, %cst_115 {dimension_numbers = #tpu.dot_dimension_numbers<[1], [0], [0], [1], [0, 0, 1, 1], [], []>} : vector<2x32xf32>, vector<32x96xf32>, vector<2x96xf32> -> vector<2x96xf32>
    %c4_116 = arith.constant 4 : index
    %c0_117 = arith.constant 0 : index
    %c0_118 = arith.constant 0 : index
    %305 = vector.load %arg9[%c4_116, %c0_117, %c0_118] : memref<8x2x96xf32, #tpu.memory_space<vmem>>, vector<1x2x96xf32>
    %306 = vector.shape_cast %305 : vector<1x2x96xf32> to vector<2x96xf32>
    %c3_119 = arith.constant 3 : index
    %c0_120 = arith.constant 0 : index
    %c0_121 = arith.constant 0 : index
    %307 = vector.load %arg10[%c3_119, %c0_120, %c0_121] : memref<8x2x96xf32, #tpu.memory_space<vmem>>, vector<1x2x96xf32>
    %308 = vector.shape_cast %307 : vector<1x2x96xf32> to vector<2x96xf32>
    %309 = vector.extract_strided_slice %306 {offsets = [0, 0], sizes = [2, 32], strides = [1, 1]} : vector<2x96xf32> to vector<2x32xf32>
    %310 = vector.extract_strided_slice %303 {offsets = [0, 0], sizes = [2, 32], strides = [1, 1]} : vector<2x96xf32> to vector<2x32xf32>
    %311 = arith.addf %309, %310 : vector<2x32xf32>
    %312 = arith.negf %311 : vector<2x32xf32>
    %313 = math.exp %312 : vector<2x32xf32>
    %cst_122 = arith.constant 1.000000e+00 : f32
    %314 = vector.broadcast %cst_122 : f32 to vector<2x32xf32>
    %315 = arith.addf %314, %313 : vector<2x32xf32>
    %316 = arith.divf %314, %315 : vector<2x32xf32>
    %317 = vector.extract_strided_slice %306 {offsets = [0, 32], sizes = [2, 32], strides = [1, 1]} : vector<2x96xf32> to vector<2x32xf32>
    %318 = vector.extract_strided_slice %303 {offsets = [0, 32], sizes = [2, 32], strides = [1, 1]} : vector<2x96xf32> to vector<2x32xf32>
    %319 = arith.addf %317, %318 : vector<2x32xf32>
    %320 = arith.negf %319 : vector<2x32xf32>
    %321 = math.exp %320 : vector<2x32xf32>
    %cst_123 = arith.constant 1.000000e+00 : f32
    %322 = vector.broadcast %cst_123 : f32 to vector<2x32xf32>
    %323 = arith.addf %322, %321 : vector<2x32xf32>
    %324 = arith.divf %322, %323 : vector<2x32xf32>
    %325 = vector.extract_strided_slice %306 {offsets = [0, 64], sizes = [2, 32], strides = [1, 1]} : vector<2x96xf32> to vector<2x32xf32>
    %326 = vector.extract_strided_slice %303 {offsets = [0, 64], sizes = [2, 32], strides = [1, 1]} : vector<2x96xf32> to vector<2x32xf32>
    %327 = arith.addf %326, %32 : vector<2x32xf32>
    %328 = arith.mulf %316, %327 : vector<2x32xf32>
    %329 = arith.addf %325, %328 : vector<2x32xf32>
    %330 = math.tanh %329 : vector<2x32xf32>
    %cst_124 = arith.constant 1.000000e+00 : f32
    %331 = vector.broadcast %cst_124 : f32 to vector<2x32xf32>
    %332 = arith.subf %331, %324 : vector<2x32xf32>
    %333 = arith.mulf %332, %330 : vector<2x32xf32>
    %334 = arith.mulf %324, %269 : vector<2x32xf32>
    %335 = arith.addf %333, %334 : vector<2x32xf32>
    %c4_125 = arith.constant 4 : index
    %c0_126 = arith.constant 0 : index
    %c0_127 = arith.constant 0 : index
    %336 = vector.load %arg7[%c4_125, %c0_126, %c0_127] : memref<8x2x32xf32, #tpu.memory_space<vmem>>, vector<1x2x32xf32>
    %337 = vector.shape_cast %336 : vector<1x2x32xf32> to vector<2x32xf32>
    %338 = vector.shape_cast %335 : vector<2x32xf32> to vector<1x2x32xf32>
    tpu.vector_store %arg7[%c4_125, %c0_126, %c0_127], %338 {strides = array<i32>} : memref<8x2x32xf32, #tpu.memory_space<vmem>>, vector<1x2x32xf32>,
    %339 = vector.extract_strided_slice %308 {offsets = [0, 0], sizes = [2, 32], strides = [1, 1]} : vector<2x96xf32> to vector<2x32xf32>
    %340 = vector.extract_strided_slice %304 {offsets = [0, 0], sizes = [2, 32], strides = [1, 1]} : vector<2x96xf32> to vector<2x32xf32>
    %341 = arith.addf %339, %340 : vector<2x32xf32>
    %342 = arith.negf %341 : vector<2x32xf32>
    %343 = math.exp %342 : vector<2x32xf32>
    %cst_128 = arith.constant 1.000000e+00 : f32
    %344 = vector.broadcast %cst_128 : f32 to vector<2x32xf32>
    %345 = arith.addf %344, %343 : vector<2x32xf32>
    %346 = arith.divf %344, %345 : vector<2x32xf32>
    %347 = vector.extract_strided_slice %308 {offsets = [0, 32], sizes = [2, 32], strides = [1, 1]} : vector<2x96xf32> to vector<2x32xf32>
    %348 = vector.extract_strided_slice %304 {offsets = [0, 32], sizes = [2, 32], strides = [1, 1]} : vector<2x96xf32> to vector<2x32xf32>
    %349 = arith.addf %347, %348 : vector<2x32xf32>
    %350 = arith.negf %349 : vector<2x32xf32>
    %351 = math.exp %350 : vector<2x32xf32>
    %cst_129 = arith.constant 1.000000e+00 : f32
    %352 = vector.broadcast %cst_129 : f32 to vector<2x32xf32>
    %353 = arith.addf %352, %351 : vector<2x32xf32>
    %354 = arith.divf %352, %353 : vector<2x32xf32>
    %355 = vector.extract_strided_slice %308 {offsets = [0, 64], sizes = [2, 32], strides = [1, 1]} : vector<2x96xf32> to vector<2x32xf32>
    %356 = vector.extract_strided_slice %304 {offsets = [0, 64], sizes = [2, 32], strides = [1, 1]} : vector<2x96xf32> to vector<2x32xf32>
    %357 = arith.addf %356, %36 : vector<2x32xf32>
    %358 = arith.mulf %346, %357 : vector<2x32xf32>
    %359 = arith.addf %355, %358 : vector<2x32xf32>
    %360 = math.tanh %359 : vector<2x32xf32>
    %cst_130 = arith.constant 1.000000e+00 : f32
    %361 = vector.broadcast %cst_130 : f32 to vector<2x32xf32>
    %362 = arith.subf %361, %354 : vector<2x32xf32>
    %363 = arith.mulf %362, %360 : vector<2x32xf32>
    %364 = arith.mulf %354, %299 : vector<2x32xf32>
    %365 = arith.addf %363, %364 : vector<2x32xf32>
    %c3_131 = arith.constant 3 : index
    %c0_132 = arith.constant 0 : index
    %c0_133 = arith.constant 0 : index
    %366 = vector.load %arg8[%c3_131, %c0_132, %c0_133] : memref<8x2x32xf32, #tpu.memory_space<vmem>>, vector<1x2x32xf32>
    %367 = vector.shape_cast %366 : vector<1x2x32xf32> to vector<2x32xf32>
    %368 = vector.shape_cast %365 : vector<2x32xf32> to vector<1x2x32xf32>
    tpu.vector_store %arg8[%c3_131, %c0_132, %c0_133], %368 {strides = array<i32>} : memref<8x2x32xf32, #tpu.memory_space<vmem>>, vector<1x2x32xf32>,
    %cst_134 = arith.constant dense<0.000000e+00> : vector<2x96xf32>
    %369 = tpu.matmul %335, %26, %cst_134 {dimension_numbers = #tpu.dot_dimension_numbers<[1], [0], [0], [1], [0, 0, 1, 1], [], []>} : vector<2x32xf32>, vector<32x96xf32>, vector<2x96xf32> -> vector<2x96xf32>
    %cst_135 = arith.constant dense<0.000000e+00> : vector<2x96xf32>
    %370 = tpu.matmul %365, %28, %cst_135 {dimension_numbers = #tpu.dot_dimension_numbers<[1], [0], [0], [1], [0, 0, 1, 1], [], []>} : vector<2x32xf32>, vector<32x96xf32>, vector<2x96xf32> -> vector<2x96xf32>
    %c5_136 = arith.constant 5 : index
    %c0_137 = arith.constant 0 : index
    %c0_138 = arith.constant 0 : index
    %371 = vector.load %arg9[%c5_136, %c0_137, %c0_138] : memref<8x2x96xf32, #tpu.memory_space<vmem>>, vector<1x2x96xf32>
    %372 = vector.shape_cast %371 : vector<1x2x96xf32> to vector<2x96xf32>
    %c2_139 = arith.constant 2 : index
    %c0_140 = arith.constant 0 : index
    %c0_141 = arith.constant 0 : index
    %373 = vector.load %arg10[%c2_139, %c0_140, %c0_141] : memref<8x2x96xf32, #tpu.memory_space<vmem>>, vector<1x2x96xf32>
    %374 = vector.shape_cast %373 : vector<1x2x96xf32> to vector<2x96xf32>
    %375 = vector.extract_strided_slice %372 {offsets = [0, 0], sizes = [2, 32], strides = [1, 1]} : vector<2x96xf32> to vector<2x32xf32>
    %376 = vector.extract_strided_slice %369 {offsets = [0, 0], sizes = [2, 32], strides = [1, 1]} : vector<2x96xf32> to vector<2x32xf32>
    %377 = arith.addf %375, %376 : vector<2x32xf32>
    %378 = arith.negf %377 : vector<2x32xf32>
    %379 = math.exp %378 : vector<2x32xf32>
    %cst_142 = arith.constant 1.000000e+00 : f32
    %380 = vector.broadcast %cst_142 : f32 to vector<2x32xf32>
    %381 = arith.addf %380, %379 : vector<2x32xf32>
    %382 = arith.divf %380, %381 : vector<2x32xf32>
    %383 = vector.extract_strided_slice %372 {offsets = [0, 32], sizes = [2, 32], strides = [1, 1]} : vector<2x96xf32> to vector<2x32xf32>
    %384 = vector.extract_strided_slice %369 {offsets = [0, 32], sizes = [2, 32], strides = [1, 1]} : vector<2x96xf32> to vector<2x32xf32>
    %385 = arith.addf %383, %384 : vector<2x32xf32>
    %386 = arith.negf %385 : vector<2x32xf32>
    %387 = math.exp %386 : vector<2x32xf32>
    %cst_143 = arith.constant 1.000000e+00 : f32
    %388 = vector.broadcast %cst_143 : f32 to vector<2x32xf32>
    %389 = arith.addf %388, %387 : vector<2x32xf32>
    %390 = arith.divf %388, %389 : vector<2x32xf32>
    %391 = vector.extract_strided_slice %372 {offsets = [0, 64], sizes = [2, 32], strides = [1, 1]} : vector<2x96xf32> to vector<2x32xf32>
    %392 = vector.extract_strided_slice %369 {offsets = [0, 64], sizes = [2, 32], strides = [1, 1]} : vector<2x96xf32> to vector<2x32xf32>
    %393 = arith.addf %392, %32 : vector<2x32xf32>
    %394 = arith.mulf %382, %393 : vector<2x32xf32>
    %395 = arith.addf %391, %394 : vector<2x32xf32>
    %396 = math.tanh %395 : vector<2x32xf32>
    %cst_144 = arith.constant 1.000000e+00 : f32
    %397 = vector.broadcast %cst_144 : f32 to vector<2x32xf32>
    %398 = arith.subf %397, %390 : vector<2x32xf32>
    %399 = arith.mulf %398, %396 : vector<2x32xf32>
    %400 = arith.mulf %390, %335 : vector<2x32xf32>
    %401 = arith.addf %399, %400 : vector<2x32xf32>
    %c5_145 = arith.constant 5 : index
    %c0_146 = arith.constant 0 : index
    %c0_147 = arith.constant 0 : index
    %402 = vector.load %arg7[%c5_145, %c0_146, %c0_147] : memref<8x2x32xf32, #tpu.memory_space<vmem>>, vector<1x2x32xf32>
    %403 = vector.shape_cast %402 : vector<1x2x32xf32> to vector<2x32xf32>
    %404 = vector.shape_cast %401 : vector<2x32xf32> to vector<1x2x32xf32>
    tpu.vector_store %arg7[%c5_145, %c0_146, %c0_147], %404 {strides = array<i32>} : memref<8x2x32xf32, #tpu.memory_space<vmem>>, vector<1x2x32xf32>,
    %405 = vector.extract_strided_slice %374 {offsets = [0, 0], sizes = [2, 32], strides = [1, 1]} : vector<2x96xf32> to vector<2x32xf32>
    %406 = vector.extract_strided_slice %370 {offsets = [0, 0], sizes = [2, 32], strides = [1, 1]} : vector<2x96xf32> to vector<2x32xf32>
    %407 = arith.addf %405, %406 : vector<2x32xf32>
    %408 = arith.negf %407 : vector<2x32xf32>
    %409 = math.exp %408 : vector<2x32xf32>
    %cst_148 = arith.constant 1.000000e+00 : f32
    %410 = vector.broadcast %cst_148 : f32 to vector<2x32xf32>
    %411 = arith.addf %410, %409 : vector<2x32xf32>
    %412 = arith.divf %410, %411 : vector<2x32xf32>
    %413 = vector.extract_strided_slice %374 {offsets = [0, 32], sizes = [2, 32], strides = [1, 1]} : vector<2x96xf32> to vector<2x32xf32>
    %414 = vector.extract_strided_slice %370 {offsets = [0, 32], sizes = [2, 32], strides = [1, 1]} : vector<2x96xf32> to vector<2x32xf32>
    %415 = arith.addf %413, %414 : vector<2x32xf32>
    %416 = arith.negf %415 : vector<2x32xf32>
    %417 = math.exp %416 : vector<2x32xf32>
    %cst_149 = arith.constant 1.000000e+00 : f32
    %418 = vector.broadcast %cst_149 : f32 to vector<2x32xf32>
    %419 = arith.addf %418, %417 : vector<2x32xf32>
    %420 = arith.divf %418, %419 : vector<2x32xf32>
    %421 = vector.extract_strided_slice %374 {offsets = [0, 64], sizes = [2, 32], strides = [1, 1]} : vector<2x96xf32> to vector<2x32xf32>
    %422 = vector.extract_strided_slice %370 {offsets = [0, 64], sizes = [2, 32], strides = [1, 1]} : vector<2x96xf32> to vector<2x32xf32>
    %423 = arith.addf %422, %36 : vector<2x32xf32>
    %424 = arith.mulf %412, %423 : vector<2x32xf32>
    %425 = arith.addf %421, %424 : vector<2x32xf32>
    %426 = math.tanh %425 : vector<2x32xf32>
    %cst_150 = arith.constant 1.000000e+00 : f32
    %427 = vector.broadcast %cst_150 : f32 to vector<2x32xf32>
    %428 = arith.subf %427, %420 : vector<2x32xf32>
    %429 = arith.mulf %428, %426 : vector<2x32xf32>
    %430 = arith.mulf %420, %365 : vector<2x32xf32>
    %431 = arith.addf %429, %430 : vector<2x32xf32>
    %c2_151 = arith.constant 2 : index
    %c0_152 = arith.constant 0 : index
    %c0_153 = arith.constant 0 : index
    %432 = vector.load %arg8[%c2_151, %c0_152, %c0_153] : memref<8x2x32xf32, #tpu.memory_space<vmem>>, vector<1x2x32xf32>
    %433 = vector.shape_cast %432 : vector<1x2x32xf32> to vector<2x32xf32>
    %434 = vector.shape_cast %431 : vector<2x32xf32> to vector<1x2x32xf32>
    tpu.vector_store %arg8[%c2_151, %c0_152, %c0_153], %434 {strides = array<i32>} : memref<8x2x32xf32, #tpu.memory_space<vmem>>, vector<1x2x32xf32>,
    %cst_154 = arith.constant dense<0.000000e+00> : vector<2x96xf32>
    %435 = tpu.matmul %401, %26, %cst_154 {dimension_numbers = #tpu.dot_dimension_numbers<[1], [0], [0], [1], [0, 0, 1, 1], [], []>} : vector<2x32xf32>, vector<32x96xf32>, vector<2x96xf32> -> vector<2x96xf32>
    %cst_155 = arith.constant dense<0.000000e+00> : vector<2x96xf32>
    %436 = tpu.matmul %431, %28, %cst_155 {dimension_numbers = #tpu.dot_dimension_numbers<[1], [0], [0], [1], [0, 0, 1, 1], [], []>} : vector<2x32xf32>, vector<32x96xf32>, vector<2x96xf32> -> vector<2x96xf32>
    %c6_156 = arith.constant 6 : index
    %c0_157 = arith.constant 0 : index
    %c0_158 = arith.constant 0 : index
    %437 = vector.load %arg9[%c6_156, %c0_157, %c0_158] : memref<8x2x96xf32, #tpu.memory_space<vmem>>, vector<1x2x96xf32>
    %438 = vector.shape_cast %437 : vector<1x2x96xf32> to vector<2x96xf32>
    %c1_159 = arith.constant 1 : index
    %c0_160 = arith.constant 0 : index
    %c0_161 = arith.constant 0 : index
    %439 = vector.load %arg10[%c1_159, %c0_160, %c0_161] : memref<8x2x96xf32, #tpu.memory_space<vmem>>, vector<1x2x96xf32>
    %440 = vector.shape_cast %439 : vector<1x2x96xf32> to vector<2x96xf32>
    %441 = vector.extract_strided_slice %438 {offsets = [0, 0], sizes = [2, 32], strides = [1, 1]} : vector<2x96xf32> to vector<2x32xf32>
    %442 = vector.extract_strided_slice %435 {offsets = [0, 0], sizes = [2, 32], strides = [1, 1]} : vector<2x96xf32> to vector<2x32xf32>
    %443 = arith.addf %441, %442 : vector<2x32xf32>
    %444 = arith.negf %443 : vector<2x32xf32>
    %445 = math.exp %444 : vector<2x32xf32>
    %cst_162 = arith.constant 1.000000e+00 : f32
    %446 = vector.broadcast %cst_162 : f32 to vector<2x32xf32>
    %447 = arith.addf %446, %445 : vector<2x32xf32>
    %448 = arith.divf %446, %447 : vector<2x32xf32>
    %449 = vector.extract_strided_slice %438 {offsets = [0, 32], sizes = [2, 32], strides = [1, 1]} : vector<2x96xf32> to vector<2x32xf32>
    %450 = vector.extract_strided_slice %435 {offsets = [0, 32], sizes = [2, 32], strides = [1, 1]} : vector<2x96xf32> to vector<2x32xf32>
    %451 = arith.addf %449, %450 : vector<2x32xf32>
    %452 = arith.negf %451 : vector<2x32xf32>
    %453 = math.exp %452 : vector<2x32xf32>
    %cst_163 = arith.constant 1.000000e+00 : f32
    %454 = vector.broadcast %cst_163 : f32 to vector<2x32xf32>
    %455 = arith.addf %454, %453 : vector<2x32xf32>
    %456 = arith.divf %454, %455 : vector<2x32xf32>
    %457 = vector.extract_strided_slice %438 {offsets = [0, 64], sizes = [2, 32], strides = [1, 1]} : vector<2x96xf32> to vector<2x32xf32>
    %458 = vector.extract_strided_slice %435 {offsets = [0, 64], sizes = [2, 32], strides = [1, 1]} : vector<2x96xf32> to vector<2x32xf32>
    %459 = arith.addf %458, %32 : vector<2x32xf32>
    %460 = arith.mulf %448, %459 : vector<2x32xf32>
    %461 = arith.addf %457, %460 : vector<2x32xf32>
    %462 = math.tanh %461 : vector<2x32xf32>
    %cst_164 = arith.constant 1.000000e+00 : f32
    %463 = vector.broadcast %cst_164 : f32 to vector<2x32xf32>
    %464 = arith.subf %463, %456 : vector<2x32xf32>
    %465 = arith.mulf %464, %462 : vector<2x32xf32>
    %466 = arith.mulf %456, %401 : vector<2x32xf32>
    %467 = arith.addf %465, %466 : vector<2x32xf32>
    %c6_165 = arith.constant 6 : index
    %c0_166 = arith.constant 0 : index
    %c0_167 = arith.constant 0 : index
    %468 = vector.load %arg7[%c6_165, %c0_166, %c0_167] : memref<8x2x32xf32, #tpu.memory_space<vmem>>, vector<1x2x32xf32>
    %469 = vector.shape_cast %468 : vector<1x2x32xf32> to vector<2x32xf32>
    %470 = vector.shape_cast %467 : vector<2x32xf32> to vector<1x2x32xf32>
    tpu.vector_store %arg7[%c6_165, %c0_166, %c0_167], %470 {strides = array<i32>} : memref<8x2x32xf32, #tpu.memory_space<vmem>>, vector<1x2x32xf32>,
    %471 = vector.extract_strided_slice %440 {offsets = [0, 0], sizes = [2, 32], strides = [1, 1]} : vector<2x96xf32> to vector<2x32xf32>
    %472 = vector.extract_strided_slice %436 {offsets = [0, 0], sizes = [2, 32], strides = [1, 1]} : vector<2x96xf32> to vector<2x32xf32>
    %473 = arith.addf %471, %472 : vector<2x32xf32>
    %474 = arith.negf %473 : vector<2x32xf32>
    %475 = math.exp %474 : vector<2x32xf32>
    %cst_168 = arith.constant 1.000000e+00 : f32
    %476 = vector.broadcast %cst_168 : f32 to vector<2x32xf32>
    %477 = arith.addf %476, %475 : vector<2x32xf32>
    %478 = arith.divf %476, %477 : vector<2x32xf32>
    %479 = vector.extract_strided_slice %440 {offsets = [0, 32], sizes = [2, 32], strides = [1, 1]} : vector<2x96xf32> to vector<2x32xf32>
    %480 = vector.extract_strided_slice %436 {offsets = [0, 32], sizes = [2, 32], strides = [1, 1]} : vector<2x96xf32> to vector<2x32xf32>
    %481 = arith.addf %479, %480 : vector<2x32xf32>
    %482 = arith.negf %481 : vector<2x32xf32>
    %483 = math.exp %482 : vector<2x32xf32>
    %cst_169 = arith.constant 1.000000e+00 : f32
    %484 = vector.broadcast %cst_169 : f32 to vector<2x32xf32>
    %485 = arith.addf %484, %483 : vector<2x32xf32>
    %486 = arith.divf %484, %485 : vector<2x32xf32>
    %487 = vector.extract_strided_slice %440 {offsets = [0, 64], sizes = [2, 32], strides = [1, 1]} : vector<2x96xf32> to vector<2x32xf32>
    %488 = vector.extract_strided_slice %436 {offsets = [0, 64], sizes = [2, 32], strides = [1, 1]} : vector<2x96xf32> to vector<2x32xf32>
    %489 = arith.addf %488, %36 : vector<2x32xf32>
    %490 = arith.mulf %478, %489 : vector<2x32xf32>
    %491 = arith.addf %487, %490 : vector<2x32xf32>
    %492 = math.tanh %491 : vector<2x32xf32>
    %cst_170 = arith.constant 1.000000e+00 : f32
    %493 = vector.broadcast %cst_170 : f32 to vector<2x32xf32>
    %494 = arith.subf %493, %486 : vector<2x32xf32>
    %495 = arith.mulf %494, %492 : vector<2x32xf32>
    %496 = arith.mulf %486, %431 : vector<2x32xf32>
    %497 = arith.addf %495, %496 : vector<2x32xf32>
    %c1_171 = arith.constant 1 : index
    %c0_172 = arith.constant 0 : index
    %c0_173 = arith.constant 0 : index
    %498 = vector.load %arg8[%c1_171, %c0_172, %c0_173] : memref<8x2x32xf32, #tpu.memory_space<vmem>>, vector<1x2x32xf32>
    %499 = vector.shape_cast %498 : vector<1x2x32xf32> to vector<2x32xf32>
    %500 = vector.shape_cast %497 : vector<2x32xf32> to vector<1x2x32xf32>
    tpu.vector_store %arg8[%c1_171, %c0_172, %c0_173], %500 {strides = array<i32>} : memref<8x2x32xf32, #tpu.memory_space<vmem>>, vector<1x2x32xf32>,
    %cst_174 = arith.constant dense<0.000000e+00> : vector<2x96xf32>
    %501 = tpu.matmul %467, %26, %cst_174 {dimension_numbers = #tpu.dot_dimension_numbers<[1], [0], [0], [1], [0, 0, 1, 1], [], []>} : vector<2x32xf32>, vector<32x96xf32>, vector<2x96xf32> -> vector<2x96xf32>
    %cst_175 = arith.constant dense<0.000000e+00> : vector<2x96xf32>
    %502 = tpu.matmul %497, %28, %cst_175 {dimension_numbers = #tpu.dot_dimension_numbers<[1], [0], [0], [1], [0, 0, 1, 1], [], []>} : vector<2x32xf32>, vector<32x96xf32>, vector<2x96xf32> -> vector<2x96xf32>
    %c7_176 = arith.constant 7 : index
    %c0_177 = arith.constant 0 : index
    %c0_178 = arith.constant 0 : index
    %503 = vector.load %arg9[%c7_176, %c0_177, %c0_178] : memref<8x2x96xf32, #tpu.memory_space<vmem>>, vector<1x2x96xf32>
    %504 = vector.shape_cast %503 : vector<1x2x96xf32> to vector<2x96xf32>
    %c0_179 = arith.constant 0 : index
    %c0_180 = arith.constant 0 : index
    %c0_181 = arith.constant 0 : index
    %505 = vector.load %arg10[%c0_179, %c0_180, %c0_181] : memref<8x2x96xf32, #tpu.memory_space<vmem>>, vector<1x2x96xf32>
    %506 = vector.shape_cast %505 : vector<1x2x96xf32> to vector<2x96xf32>
    %507 = vector.extract_strided_slice %504 {offsets = [0, 0], sizes = [2, 32], strides = [1, 1]} : vector<2x96xf32> to vector<2x32xf32>
    %508 = vector.extract_strided_slice %501 {offsets = [0, 0], sizes = [2, 32], strides = [1, 1]} : vector<2x96xf32> to vector<2x32xf32>
    %509 = arith.addf %507, %508 : vector<2x32xf32>
    %510 = arith.negf %509 : vector<2x32xf32>
    %511 = math.exp %510 : vector<2x32xf32>
    %cst_182 = arith.constant 1.000000e+00 : f32
    %512 = vector.broadcast %cst_182 : f32 to vector<2x32xf32>
    %513 = arith.addf %512, %511 : vector<2x32xf32>
    %514 = arith.divf %512, %513 : vector<2x32xf32>
    %515 = vector.extract_strided_slice %504 {offsets = [0, 32], sizes = [2, 32], strides = [1, 1]} : vector<2x96xf32> to vector<2x32xf32>
    %516 = vector.extract_strided_slice %501 {offsets = [0, 32], sizes = [2, 32], strides = [1, 1]} : vector<2x96xf32> to vector<2x32xf32>
    %517 = arith.addf %515, %516 : vector<2x32xf32>
    %518 = arith.negf %517 : vector<2x32xf32>
    %519 = math.exp %518 : vector<2x32xf32>
    %cst_183 = arith.constant 1.000000e+00 : f32
    %520 = vector.broadcast %cst_183 : f32 to vector<2x32xf32>
    %521 = arith.addf %520, %519 : vector<2x32xf32>
    %522 = arith.divf %520, %521 : vector<2x32xf32>
    %523 = vector.extract_strided_slice %504 {offsets = [0, 64], sizes = [2, 32], strides = [1, 1]} : vector<2x96xf32> to vector<2x32xf32>
    %524 = vector.extract_strided_slice %501 {offsets = [0, 64], sizes = [2, 32], strides = [1, 1]} : vector<2x96xf32> to vector<2x32xf32>
    %525 = arith.addf %524, %32 : vector<2x32xf32>
    %526 = arith.mulf %514, %525 : vector<2x32xf32>
    %527 = arith.addf %523, %526 : vector<2x32xf32>
    %528 = math.tanh %527 : vector<2x32xf32>
    %cst_184 = arith.constant 1.000000e+00 : f32
    %529 = vector.broadcast %cst_184 : f32 to vector<2x32xf32>
    %530 = arith.subf %529, %522 : vector<2x32xf32>
    %531 = arith.mulf %530, %528 : vector<2x32xf32>
    %532 = arith.mulf %522, %467 : vector<2x32xf32>
    %533 = arith.addf %531, %532 : vector<2x32xf32>
    %c7_185 = arith.constant 7 : index
    %c0_186 = arith.constant 0 : index
    %c0_187 = arith.constant 0 : index
    %534 = vector.load %arg7[%c7_185, %c0_186, %c0_187] : memref<8x2x32xf32, #tpu.memory_space<vmem>>, vector<1x2x32xf32>
    %535 = vector.shape_cast %534 : vector<1x2x32xf32> to vector<2x32xf32>
    %536 = vector.shape_cast %533 : vector<2x32xf32> to vector<1x2x32xf32>
    tpu.vector_store %arg7[%c7_185, %c0_186, %c0_187], %536 {strides = array<i32>} : memref<8x2x32xf32, #tpu.memory_space<vmem>>, vector<1x2x32xf32>,
    %537 = vector.extract_strided_slice %506 {offsets = [0, 0], sizes = [2, 32], strides = [1, 1]} : vector<2x96xf32> to vector<2x32xf32>
    %538 = vector.extract_strided_slice %502 {offsets = [0, 0], sizes = [2, 32], strides = [1, 1]} : vector<2x96xf32> to vector<2x32xf32>
    %539 = arith.addf %537, %538 : vector<2x32xf32>
    %540 = arith.negf %539 : vector<2x32xf32>
    %541 = math.exp %540 : vector<2x32xf32>
    %cst_188 = arith.constant 1.000000e+00 : f32
    %542 = vector.broadcast %cst_188 : f32 to vector<2x32xf32>
    %543 = arith.addf %542, %541 : vector<2x32xf32>
    %544 = arith.divf %542, %543 : vector<2x32xf32>
    %545 = vector.extract_strided_slice %506 {offsets = [0, 32], sizes = [2, 32], strides = [1, 1]} : vector<2x96xf32> to vector<2x32xf32>
    %546 = vector.extract_strided_slice %502 {offsets = [0, 32], sizes = [2, 32], strides = [1, 1]} : vector<2x96xf32> to vector<2x32xf32>
    %547 = arith.addf %545, %546 : vector<2x32xf32>
    %548 = arith.negf %547 : vector<2x32xf32>
    %549 = math.exp %548 : vector<2x32xf32>
    %cst_189 = arith.constant 1.000000e+00 : f32
    %550 = vector.broadcast %cst_189 : f32 to vector<2x32xf32>
    %551 = arith.addf %550, %549 : vector<2x32xf32>
    %552 = arith.divf %550, %551 : vector<2x32xf32>
    %553 = vector.extract_strided_slice %506 {offsets = [0, 64], sizes = [2, 32], strides = [1, 1]} : vector<2x96xf32> to vector<2x32xf32>
    %554 = vector.extract_strided_slice %502 {offsets = [0, 64], sizes = [2, 32], strides = [1, 1]} : vector<2x96xf32> to vector<2x32xf32>
    %555 = arith.addf %554, %36 : vector<2x32xf32>
    %556 = arith.mulf %544, %555 : vector<2x32xf32>
    %557 = arith.addf %553, %556 : vector<2x32xf32>
    %558 = math.tanh %557 : vector<2x32xf32>
    %cst_190 = arith.constant 1.000000e+00 : f32
    %559 = vector.broadcast %cst_190 : f32 to vector<2x32xf32>
    %560 = arith.subf %559, %552 : vector<2x32xf32>
    %561 = arith.mulf %560, %558 : vector<2x32xf32>
    %562 = arith.mulf %552, %497 : vector<2x32xf32>
    %563 = arith.addf %561, %562 : vector<2x32xf32>
    %c0_191 = arith.constant 0 : index
    %c0_192 = arith.constant 0 : index
    %c0_193 = arith.constant 0 : index
    %564 = vector.load %arg8[%c0_191, %c0_192, %c0_193] : memref<8x2x32xf32, #tpu.memory_space<vmem>>, vector<1x2x32xf32>
    %565 = vector.shape_cast %564 : vector<1x2x32xf32> to vector<2x32xf32>
    %566 = vector.shape_cast %563 : vector<2x32xf32> to vector<1x2x32xf32>
    tpu.vector_store %arg8[%c0_191, %c0_192, %c0_193], %566 {strides = array<i32>} : memref<8x2x32xf32, #tpu.memory_space<vmem>>, vector<1x2x32xf32>,
    %c0_194 = arith.constant 0 : index
    %c0_195 = arith.constant 0 : index
    %567 = vector.load %arg11[%c0_194, %c0_195] : memref<2x32xf32, #tpu.memory_space<vmem>>, vector<2x32xf32>
    tpu.vector_store %arg11[%c0_194, %c0_195], %533 {strides = array<i32>} : memref<2x32xf32, #tpu.memory_space<vmem>>, vector<2x32xf32>,
    %c0_196 = arith.constant 0 : index
    %c0_197 = arith.constant 0 : index
    %568 = vector.load %arg12[%c0_196, %c0_197] : memref<2x32xf32, #tpu.memory_space<vmem>>, vector<2x32xf32>
    tpu.vector_store %arg12[%c0_196, %c0_197], %563 {strides = array<i32>} : memref<2x32xf32, #tpu.memory_space<vmem>>, vector<2x32xf32>,
    return
  }
  func.func @transform_0(%arg0: i32) -> (i32, i32, i32) {
    %c0_i32 = arith.constant 0 : i32
    %c0_i32_0 = arith.constant 0 : i32
    %c0_i32_1 = arith.constant 0 : i32
    return %arg0, %c0_i32, %c0_i32_0 : i32, i32, i32
  }
  func.func @transform_1(%arg0: i32) -> (i32, i32, i32) {
    %c0_i32 = arith.constant 0 : i32
    %0 = arith.subi %c0_i32, %arg0 : i32
    %c0_i32_0 = arith.constant 0 : i32
    %c0_i32_1 = arith.constant 0 : i32
    %c0_i32_2 = arith.constant 0 : i32
    return %0, %c0_i32_0, %c0_i32_1 : i32, i32, i32
  }
  func.func @transform_2(%arg0: i32) -> (i32, i32, i32) {
    %c0_i32 = arith.constant 0 : i32
    %c0_i32_0 = arith.constant 0 : i32
    %c0_i32_1 = arith.constant 0 : i32
    %c0_i32_2 = arith.constant 0 : i32
    return %c0_i32, %c0_i32_0, %c0_i32_1 : i32, i32, i32
  }
  func.func @transform_3(%arg0: i32) -> (i32, i32, i32) {
    %c0_i32 = arith.constant 0 : i32
    %c0_i32_0 = arith.constant 0 : i32
    %c0_i32_1 = arith.constant 0 : i32
    %c0_i32_2 = arith.constant 0 : i32
    return %c0_i32, %c0_i32_0, %c0_i32_1 : i32, i32, i32
  }
  func.func @transform_4(%arg0: i32) -> (i32, i32, i32) {
    %c0_i32 = arith.constant 0 : i32
    %c0_i32_0 = arith.constant 0 : i32
    %c0_i32_1 = arith.constant 0 : i32
    %c0_i32_2 = arith.constant 0 : i32
    return %c0_i32, %c0_i32_0, %c0_i32_1 : i32, i32, i32
  }
  func.func @transform_5(%arg0: i32) -> (i32, i32, i32) {
    %c0_i32 = arith.constant 0 : i32
    %c0_i32_0 = arith.constant 0 : i32
    %c0_i32_1 = arith.constant 0 : i32
    %c0_i32_2 = arith.constant 0 : i32
    return %c0_i32, %c0_i32_0, %c0_i32_1 : i32, i32, i32
  }
  func.func @transform_6(%arg0: i32) -> (i32, i32, i32) {
    %c0_i32 = arith.constant 0 : i32
    %c0_i32_0 = arith.constant 0 : i32
    %c0_i32_1 = arith.constant 0 : i32
    return %arg0, %c0_i32, %c0_i32_0 : i32, i32, i32
  }
  func.func @transform_7(%arg0: i32) -> (i32, i32, i32) {
    %c0_i32 = arith.constant 0 : i32
    %0 = arith.subi %c0_i32, %arg0 : i32
    %c0_i32_0 = arith.constant 0 : i32
    %c0_i32_1 = arith.constant 0 : i32
    %c0_i32_2 = arith.constant 0 : i32
    return %0, %c0_i32_0, %c0_i32_1 : i32, i32, i32
  }
}

</mosaic_0001>

<bundles_post_ra>
// kernel: tpu_custom_call.1
= control target key start
LH: loop header
LB: loop body
LE: loop exit
PB: predicated region body
PF: predicated region fallthrough
CT: control target
= control target key end

     0   :  { %13 = vsyncpa [#allocation7], 0  ;;  %s3343_s0 = inlined_call_operand.hbm [shape: f32[8,2,32], index: 0, kind: input, shape index: {}]   ;;  %s3344_s1 = inlined_call_operand.hbm [shape: f32[8,2,32], index: 1, kind: input, shape index: {}]   ;;  %s3345_s2 = inlined_call_operand.hbm [shape: f32[2,32,96], index: 2, kind: input, shape index: {}]   ;;  %s3346_s3 = inlined_call_operand.hbm [shape: f32[2,32,96], index: 3, kind: input, shape index: {}]   ;;  %s3347_s4 = inlined_call_operand.vmem [shape: f32[2,1,96], index: 4, kind: input, shape index: {}]   ;;  %s3348_s5 = inlined_call_operand.vmem [shape: f32[2,1,32], index: 5, kind: input, shape index: {}]   ;;  %s3349_s6 = inlined_call_operand.hbm [shape: f32[8,2,32], index: 6, kind: output, shape index: {0}]   ;;  %s3350_s7 = inlined_call_operand.hbm [shape: f32[8,2,32], index: 7, kind: output, shape index: {1}]  }
   0x1   :  { %14 = vsyncpa [#allocation10], 0 }
   0x2   :  { %15 = vsyncpa [#allocation13], 0 }
   0x3   :  { %16 = vsyncpa [#allocation8], 0 }
   0x4   :  { %17 = vsyncpa [#allocation16], 0  ;;  %s2858_s24 = smov [#allocation9]   ;;  %s2859_s26 = smov [#allocation6]  }
   0x5   :  { %s39_s25 = sshll.u32 %s2858_s24, 4  ;;  %s23_s27 = sshll.u32 %s2859_s26, 4  ;;  %s40_s25 = int_to_ptr.vmem [resolvable:$true] %s39_s25  ;;  %s24_s27 = int_to_ptr.vmem [resolvable:$true] %s23_s27 }
   0x6   :  { %s2736_s28 = scalar_lea.vmem %s40_s25, 256  ;;  %p2741_p1 = scmp.lt.s32.totalorder %s40_s25, %s40_s25 }
   0x7   :  { %p2737_p0 = scmp.ne.s32.totalorder %s40_s25, %s2736_s28  ;;  %p2742_p2 = scmp.lt.s32.totalorder %s2736_s28, %s2736_s28 }
   0x9   :  { %p2743_p3 = por %p2742_p2, %p2741_p1 }
   0xb   :  { %p2744_p4 = pnand %p2743_p3, %p2737_p0 }
   0xd   :  { %2747 = shalt.err (!%p2744_p4)
}
   0xe   :  { %s2860_s29 = smov 32   ;;  %s2861_s30 = smov 2  }
   0xf   :  { %45 = dma.hbm_to_vmem [thread:$0]  %s3344_s1, 256, %s40_s25, [#allocation10], %s2860_s29, %s2860_s29, %s2861_s30  }
  0x10   :  { %s2756_s10 = scalar_lea.vmem %s24_s27, 256  ;;  %p2761_p6 = scmp.lt.s32.totalorder %s24_s27, %s24_s27 }
  0x11   :  { %p2757_p5 = scmp.ne.s32.totalorder %s24_s27, %s2756_s10  ;;  %p2762_p7 = scmp.lt.s32.totalorder %s2756_s10, %s2756_s10 }
  0x13   :  { %p2763_p8 = por %p2762_p7, %p2761_p6 }
  0x15   :  { %p2764_p9 = pnand %p2763_p8, %p2757_p5 }
  0x17   :  { %2767 = shalt.err (!%p2764_p9)
}
  0x18   :  { %29 = dma.hbm_to_vmem [thread:$0]  %s3343_s0, 256, %s24_s27, [#allocation7], %s2860_s29, %s2860_s29, %s2861_s30  }
  0x19   :  { %s2862_s13 = smov [#allocation11]  }
  0x1a   :  { %s51_s14 = sshll.u32 %s2862_s13, 4  ;;  %s52_s14 = int_to_ptr.vmem [resolvable:$true] %s51_s14 }
  0x1b   :  { %s2776_s15 = scalar_lea.vmem %s52_s14, 1024  ;;  %p2781_p11 = scmp.lt.s32.totalorder %s52_s14, %s52_s14 }
  0x1c   :  { %p2777_p10 = scmp.ne.s32.totalorder %s52_s14, %s2776_s15  ;;  %p2782_p12 = scmp.lt.s32.totalorder %s2776_s15, %s2776_s15 }
  0x1e   :  { %p2783_p13 = por %p2782_p12, %p2781_p11 }
  0x20   :  { %p2784_p0 = pnand %p2783_p13, %p2777_p10 }
  0x22   :  { %2787 = shalt.err (!%p2784_p0)
}
  0x23   :  { %s2863_s1 = smov 128   ;;  %s2864_s16 = smov 8  }
  0x24   :  { %57 = dma.hbm_to_vmem [thread:$0]  %s3345_s2, 1024, %s52_s14, [#allocation10], %s2863_s1, %s2863_s1, %s2864_s16  }
  0x25   :  { %s2865_s19 = smov [#allocation12]  }
  0x26   :  { %s63_s20 = sshll.u32 %s2865_s19, 4  ;;  %s64_s20 = int_to_ptr.vmem [resolvable:$true] %s63_s20 }
  0x27   :  { %s2796_s0 = scalar_lea.vmem %s64_s20, 1024  ;;  %p2801_p2 = scmp.lt.s32.totalorder %s64_s20, %s64_s20 }
  0x28   :  { %p2797_p1 = scmp.ne.s32.totalorder %s64_s20, %s2796_s0  ;;  %p2802_p3 = scmp.lt.s32.totalorder %s2796_s0, %s2796_s0 }
  0x2a   :  { %p2803_p4 = por %p2802_p3, %p2801_p2 }
  0x2c   :  { %p2804_p5 = pnand %p2803_p4, %p2797_p1 }
  0x2e   :  { %2807 = shalt.err (!%p2804_p5)
}
  0x2f   :  { %69 = dma.hbm_to_vmem [thread:$0]  %s3346_s3, 1024, %s64_s20, [#allocation13], %s2863_s1, %s2863_s1, %s2864_s16  }
  0x30   :  { %2848 = dma.done.wait [#allocation7], 256  }
  0x31   :  { %2849 = vsyncadd [#allocation7], 4294967040 }
  0x32   :  { %2850 = dma.done.wait [#allocation10], 1280  }
  0x33   :  { %2851 = vsyncadd [#allocation10], 4294966016 }
  0x34   :  { %2852 = dma.done.wait [#allocation13], 1024  }
  0x35   :  { %2853 = vsyncadd [#allocation13], 4294966272  ;;  %v2866_v0 = vmov 1983009808   ;;  %v137_v2 = vlaneseq  ;;  %vm94_vm0 = vcmask 254976   ;;  %v2867_v3 = vmov 0.0  }
  0x36   :  { %v135_v1 = vunpack.c.l.s4 %v2866_v0  ;;  %95 = vst.msk [vmem:[#allocation4] sm:$0x3] %vm94_vm0, %v2867_v3  ;;  %96 = vst.msk [vmem:[#allocation5] sm:$0x3] %vm94_vm0, %v2867_v3  ;;  %v116_v6 = vld [vmem:[#allocation11 + $0x18] sm:$0xff]  ;;  %v115_v8 = vld [vmem:[#allocation11 + $0x10] sm:$0xff] }
  0x37   :  { %v138_v5 = vshrl.u32 %v137_v2, 7  ;;  %v303_v7 = vld [vmem:[#allocation11 + $0x38] sm:$0xff]  ;;  %2411 = vmatprep.subr.mxu0 %v116_v6  ;;  %v302_v9 = vld [vmem:[#allocation11 + $0x30] sm:$0xff]  ;;  %v114_v10 = vld [vmem:[#allocation11 + $0x8] sm:$0xff]  ;;  %vm166_vm1 = vcmask 261120   ;;  %s2868_s23 = smov 64  }
  0x38   :  { %v136_v4 = vunpack.c.0.s8 %v135_v1  ;;  %2422 = vmatprep.subr.mxu1 %v303_v7  ;;  %v301_v11 = vld [vmem:[#allocation11 + $0x28] sm:$0xff]  ;;  %2412 = vmatpush3.msra.mxu0 %v116_v6  ;;  %v113_v12 = vld [vmem:[#allocation11] sm:$0xff]  ;;  %v105_v21 = vld [vmem:[#allocation9] sm:$0x3]  ;;  %vm2869_vm2 = vmmov 0   ;;  %vm290_vm3 = vcmask 779264  }
  0x39   :  { %2423 = vmatpush3.msra.mxu1 %v303_v7  ;;  %v300_v13 = vld [vmem:[#allocation11 + $0x20] sm:$0xff]  ;;  %2413 = vmatprep.subr.mxu0 %v115_v8  ;;  %v106_v22 = vld [vmem:[#allocation9 + $0x2] sm:$0x3]  ;;  %v107_v23 = vld [vmem:[#allocation9 + $0x4] sm:$0x3]  ;;  %s2871_s8 = smov [#allocation14]  }
  0x3a   :  { %v97_v14 = vld [vmem:[#allocation6] sm:$0x3]  ;;  %v2935_v15 = vsub.s32 %v136_v4, %v138_v5  ;;  %2424 = vmatprep.subr.mxu1 %v302_v9  ;;  %v98_v16 = vld [vmem:[#allocation6 + $0x2] sm:$0x3]  ;;  %v99_v17 = vld [vmem:[#allocation6 + $0x4] sm:$0x3]  ;;  %2414 = vmatpush3.msra.mxu0 %v115_v8  ;;  %v320_v25 = vcombine.low %v105_v21, %v106_v22 }
  0x3b   :  { %v100_v18 = vld [vmem:[#allocation6 + $0x6] sm:$0x3]  ;;  %2425 = vmatpush3.msra.mxu1 %v302_v9  ;;  %v132_v19 = vcombine.low %v97_v14, %v98_v16  ;;  %2415 = vmatprep.subr.mxu0 %v114_v10  ;;  %v108_v24 = vld [vmem:[#allocation9 + $0x6] sm:$0x3]  ;;  %v101_v26 = vld [vmem:[#allocation6 + $0x8] sm:$0x3] }
  0x3c   :  { %v133_v20 = vcombine.low %v99_v17, %v100_v18  ;;  %2426 = vmatprep.subr.mxu1 %v301_v11  ;;  %v102_v27 = vld [vmem:[#allocation6 + $0xa] sm:$0x3]  ;;  %2416 = vmatpush3.msra.mxu0 %v114_v10  ;;  %v321_v30 = vcombine.low %v107_v23, %v108_v24  ;;  %v103_v31 = vld [vmem:[#allocation6 + $0xc] sm:$0x3]  ;;  %v104_v32 = vld [vmem:[#allocation6 + $0xe] sm:$0x3]  ;;  %v328_v34 = vrot.slane %v320_v25, %v2935_v15 }
  0x3d   :  { %2427 = vmatpush3.msra.mxu1 %v301_v11  ;;  %v140_v28 = vrot.slane %v132_v19, %v2935_v15  ;;  %v109_v33 = vld [vmem:[#allocation9 + $0x8] sm:$0x3]  ;;  %2417 = vmatprep.subr.mxu0 %v113_v12  ;;  %v149_v35 = vcombine.low %v101_v26, %v102_v27  ;;  %v150_v36 = vcombine.low %v103_v31, %v104_v32  ;;  %v110_v37 = vld [vmem:[#allocation9 + $0xa] sm:$0x3]  ;;  %v111_v38 = vld [vmem:[#allocation9 + $0xc] sm:$0x3] }
  0x3e   :  { %v147_v29 = vrot.slane %v133_v20, %v2935_v15  ;;  %2428 = vmatprep.subr.mxu1 %v300_v13  ;;  %v112_v39 = vld [vmem:[#allocation9 + $0xe] sm:$0x3]  ;;  %2418 = vmatpush3.msra.mxu0 %v113_v12  ;;  %v335_v41 = vrot.slane %v321_v30, %v2935_v15  ;;  %v337_v42 = vcombine.low %v109_v33, %v110_v37  ;;  %v2284_v51 = vld [vmem:[%s3348_s5] ss:$0 sm:$0xff]  ;;  %v2956_v53 = vld [vmem:[#allocation12 + $0x10] sm:$0xff]  ;;  %s2239_s9 = sshll.u32 %s2871_s8, 4  ;;  %s2240_s9 = int_to_ptr.vmem [resolvable:$true] %s2239_s9 }
  0x3f   :  { %2429 = vmatpush3.msra.mxu1 %v300_v13  ;;  %v157_v43 = vrot.slane %v149_v35, %v2935_v15  ;;  %v164_v44 = vrot.slane %v150_v36, %v2935_v15  ;;  %v338_v45 = vcombine.low %v111_v38, %v112_v39  ;;  %2433 = vmatprep.subr.mxu0 %v2867_v3  ;;  %v2948_v50 = vld [vmem:[#allocation12 + $0x18] sm:$0xff]  ;;  %v2965_v55 = vld [vmem:[#allocation12 + $0x8] sm:$0xff]  ;;  %v2967_v56 = vld [vmem:[#allocation12 + $0x30] sm:$0xff]  ;;  %s2872_s10 = smov [#allocation15]   ;;  %s2808_s12 = scalar_lea.vmem %s2240_s9, 256 }
  0x40   :  { %v148_v40 = vcombine.low %v140_v28, %v147_v29  ;;  %2444 = vmatprep.subr.mxu1 %v2867_v3  ;;  %v336_v46 = vcombine.low %v328_v34, %v335_v41  ;;  %v345_v47 = vrot.slane %v337_v42, %v2935_v15  ;;  %665 = vrot.lane.b32.xlu0 %v2284_v51, %s2868_s23  ;;  %v2958_v54 = vld [vmem:[#allocation12 + $0x38] sm:$0xff]  ;;  %v2973_v57 = vld [vmem:[#allocation12] sm:$0xff]  ;;  %v2975_v58 = vld [vmem:[#allocation12 + $0x28] sm:$0xff]  ;;  %s2255_s11 = sshll.u32 %s2872_s10, 4  ;;  %p2809_p6 = scmp.ne.s32.totalorder %s2240_s9, %s2808_s12  ;;  %s2256_s11 = int_to_ptr.vmem [resolvable:$true] %s2255_s11 }
  0x41   :  { %v165_v48 = vcombine.low %v157_v43, %v164_v44  ;;  %v352_v49 = vrot.slane %v338_v45, %v2935_v15  ;;  %v2979_v59 = vld [vmem:[#allocation4] sm:$0x3]  ;;  %v2983_v60 = vld [vmem:[#allocation12 + $0x20] sm:$0xff]  ;;  %v2987_v61 = vld [vmem:[#allocation5] sm:$0x3]  ;;  %p2813_p7 = scmp.lt.s32.totalorder %s2240_s9, %s2240_s9  ;;  %p2814_p8 = scmp.lt.s32.totalorder %s2808_s12, %s2808_s12 }
  0x42   :  { %2419 = vmatprep.mubr.msk.f32.mxu0 %vm166_vm1, %v148_v40  ;;  %2430 = vmatprep.mubr.msk.f32.mxu1 %vm166_vm1, %v336_v46  ;;  %v2286_v62 = vld [vmem:[%s3348_s5 + $0x1] ss:$0 sm:$0xff]  ;;  %v2277_v63 = vld [vmem:[%s3347_s4] ss:$0 sm:$0xff] }
  0x43   :  { %2420 = vmatmul.mubr.msk.f32.vlgmr.msra.gmra.mxu0 %vm166_vm1, %v165_v48  ;;  %v353_v52 = vcombine.low %v345_v47, %v352_v49  ;;  %v2281_v1 = vld [vmem:[%s3347_s4 + $0x1] ss:$0 sm:$0xff]  ;;  %s2870_s4 = smov 96   ;;  %p2815_p9 = por %p2814_p8, %p2813_p7 }
  0x44   :  { %2434 = vmatpush3.msra.mxu0 %v2948_v50  ;;  %2441 = vmatprep.mubr.msk.f32.mxu0 %vm2869_vm2, %v2867_v3 }
  0x45   :  { %2431 = vmatmul.mubr.msk.f32.vlgmr.msra.gmra.mxu1 %vm166_vm1, %v353_v52  ;;  %2435 = vmatprep.subr.mxu0 %v2867_v3  ;;  %p2816_p10 = pnand %p2815_p9, %p2809_p6 }
  0x46   :  { %2436 = vmatpush3.msra.mxu0 %v2956_v53  ;;  %2445 = vmatpush3.msra.mxu1 %v2958_v54 }
  0x47   :  { %2437 = vmatprep.subr.mxu0 %v2867_v3  ;;  %2446 = vmatprep.subr.mxu1 %v2867_v3 }
  0x48   :  { %2438 = vmatpush3.msra.mxu0 %v2965_v55  ;;  %2447 = vmatpush3.msra.mxu1 %v2967_v56 }
  0x49   :  { %2439 = vmatprep.subr.mxu0 %v2867_v3  ;;  %2448 = vmatprep.subr.mxu1 %v2867_v3 }
  0x4a   :  { %2440 = vmatpush3.msra.mxu0 %v2973_v57  ;;  %2449 = vmatpush3.msra.mxu1 %v2975_v58 }
  0x4b   :  { %2442 = vmatmul.mubr.msk.f32.vlgmr.msra.gmra.mxu0 %vm166_vm1, %v2979_v59  ;;  %2450 = vmatprep.subr.mxu1 %v2867_v3 }
  0x4c   :  { %2451 = vmatpush3.msra.mxu1 %v2983_v60  ;;  %2452 = vmatprep.mubr.msk.f32.mxu1 %vm2869_vm2, %v2867_v3 }
  0x4d   :  { %2453 = vmatmul.mubr.msk.f32.vlgmr.msra.gmra.mxu1 %vm166_vm1, %v2987_v61  ;;  %704 = vrot.lane.b32.xlu0 %v2286_v62, %s2868_s23 }
  0x4e   :  { %2455 = vmatprep.subr.mxu0 %v2867_v3  ;;  %2466 = vmatprep.subr.mxu1 %v2867_v3 }
  0x4f   :  { %2456 = vmatpush3.msra.mxu0 %v2948_v50  ;;  %2467 = vmatpush3.msra.mxu1 %v2958_v54 }
  0x50   :  { %2457 = vmatprep.subr.mxu0 %v2867_v3  ;;  %2468 = vmatprep.subr.mxu1 %v2867_v3 }
  0x51   :  { %2458 = vmatpush3.msra.mxu0 %v2956_v53  ;;  %2463 = vmatprep.mubr.msk.f32.mxu0 %vm2869_vm2, %v2867_v3 }
  0x52   :  { %2459 = vmatprep.subr.mxu0 %v2867_v3  ;;  %2469 = vmatpush3.msra.mxu1 %v2967_v56 }
  0x53   :  { %2460 = vmatpush3.msra.mxu0 %v2965_v55  ;;  %2470 = vmatprep.subr.mxu1 %v2867_v3 }
  0x54   :  { %2461 = vmatprep.subr.mxu0 %v2867_v3  ;;  %2471 = vmatpush3.msra.mxu1 %v2975_v58 }
  0x55   :  { %2462 = vmatpush3.msra.mxu0 %v2973_v57  ;;  %2472 = vmatprep.subr.mxu1 %v2867_v3 }
  0x56   :  { %2473 = vmatpush3.msra.mxu1 %v2983_v60  ;;  %2474 = vmatprep.mubr.msk.f32.mxu1 %vm2869_vm2, %v2867_v3 }
  0x57   :  { %2477 = vmatprep.subr.mxu0 %v2867_v3  ;;  %2488 = vmatprep.subr.mxu1 %v2867_v3 }
  0xb2   :  { %v3029_v4 = vpop.permute.xlu0 %665 }
  0xbf   :  { %v3043_v28 = vpop.permute.xlu0 %704 }
 0x103   :  { %v2421_v0 = vpop.f32.mrf.mxu0 }
 0x104   :  { %v243_v2 = vadd.f32 %v2421_v0, %v2277_v63 }
 0x105   :  { %v2432_v5 = vpop.f32.mrf.mxu1  ;;  %v237_v6 = vpop.f32.mrf.mxu0 }
 0x106   :  { %v265_v7 = vcombine.high %v243_v2, %v243_v2  ;;  %v272_v8 = vrot.slane %v243_v2, %v2935_v15  ;;  %v430_v9 = vadd.f32 %v2432_v5, %v2281_v1  ;;  %v238_v10 = vadd.f32 %v2277_v63, %v237_v6 }
 0x107   :  { %v424_v11 = vpop.f32.mrf.mxu1 }
 0x108   :  { %v279_v12 = vrot.slane %v265_v7, %v2935_v15  ;;  %v280_v13 = vcombine.high %v272_v8, %v272_v8  ;;  %295 = vst.msk [vmem:[#allocation2 + $0x8] sm:$0x3] %vm290_vm3, %v272_v8  ;;  %v452_v14 = vcombine.high %v430_v9, %v430_v9  ;;  %v459_v16 = vrot.slane %v430_v9, %v2935_v15 }
 0x109   :  { %v248_v17 = vcombine.high %v238_v10, %v238_v10  ;;  %v255_v18 = vrot.slane %v238_v10, %v2935_v15  ;;  %v425_v19 = vadd.f32 %v2281_v1, %v424_v11 }
 0x10a   :  { %v281_v20 = vcombine.high %v279_v12, %v279_v12  ;;  %296 = vst.msk [vmem:[#allocation2 + $0xa] sm:$0x3] %vm290_vm3, %v280_v13  ;;  %297 = vst.msk [vmem:[#allocation2 + $0xc] sm:$0x3] %vm290_vm3, %v279_v12  ;;  %v466_v21 = vrot.slane %v452_v14, %v2935_v15  ;;  %v467_v22 = vcombine.high %v459_v16, %v459_v16 }
 0x10b   :  { %481 = vst.msk [vmem:[#allocation3 + $0x8] sm:$0x3] %vm290_vm3, %v459_v16  ;;  %v262_v23 = vrot.slane %v248_v17, %v2935_v15  ;;  %v263_v24 = vcombine.high %v255_v18, %v255_v18  ;;  %291 = vst.msk [vmem:[#allocation2] sm:$0x3] %vm290_vm3, %v255_v18  ;;  %v435_v25 = vcombine.high %v425_v19, %v425_v19  ;;  %v578_v27 = vpop.f32.mrf.mxu0 }
 0x10c   :  { %v442_v26 = vrot.slane %v425_v19, %v2935_v15  ;;  %298 = vst.msk [vmem:[#allocation2 + $0xe] sm:$0x3] %vm290_vm3, %v281_v20  ;;  %v468_v29 = vcombine.high %v466_v21, %v466_v21  ;;  %482 = vst.msk [vmem:[#allocation3 + $0xa] sm:$0x3] %vm290_vm3, %v467_v22  ;;  %v668_v30 = vadd.f32 %v3029_v4, %v578_v27 }
 0x10d   :  { %483 = vst.msk [vmem:[#allocation3 + $0xc] sm:$0x3] %vm290_vm3, %v466_v21  ;;  %v264_v31 = vcombine.high %v262_v23, %v262_v23  ;;  %292 = vst.msk [vmem:[#allocation2 + $0x2] sm:$0x3] %vm290_vm3, %v263_v24  ;;  %v449_v32 = vrot.slane %v435_v25, %v2935_v15  ;;  %v2443_v34 = vpop.f32.mrf.mxu0  ;;  %v651_v35 = vpop.f32.mrf.mxu1 }
 0x10e   :  { %293 = vst.msk [vmem:[#allocation2 + $0x4] sm:$0x3] %vm290_vm3, %v262_v23  ;;  %v450_v33 = vcombine.high %v442_v26, %v442_v26  ;;  %477 = vst.msk [vmem:[#allocation3] sm:$0x3] %vm290_vm3, %v442_v26  ;;  %670 = vrot.lane.b32.xlu1 %v668_v30, %s2868_s23  ;;  %v707_v36 = vadd.f32 %v3043_v28, %v651_v35 }
 0x10f   :  { %484 = vst.msk [vmem:[#allocation3 + $0xe] sm:$0x3] %vm290_vm3, %v468_v29  ;;  %294 = vst.msk [vmem:[#allocation2 + $0x6] sm:$0x3] %vm290_vm3, %v264_v31  ;;  %v451_v37 = vcombine.high %v449_v32, %v449_v32  ;;  %v2454_v38 = vpop.f32.mrf.mxu1 }
 0x110   :  { %478 = vst.msk [vmem:[#allocation3 + $0x2] sm:$0x3] %vm290_vm3, %v450_v33  ;;  %479 = vst.msk [vmem:[#allocation3 + $0x4] sm:$0x3] %vm290_vm3, %v449_v32 }
 0x111   :  { %480 = vst.msk [vmem:[#allocation3 + $0x6] sm:$0x3] %vm290_vm3, %v451_v37 }
 0x112   :  { %709 = vrot.lane.b32.xlu1 %v707_v36, %s2868_s23  ;;  %v655_v15 = vld [vmem:[#allocation2] sm:$0x3] }
 0x113   :  { %v658_v39 = vadd.f32 %v655_v15, %v578_v27 }
 0x114   :  { %v881_v27 = vld [vmem:[#allocation2 + $0x2] sm:$0x3]  ;;  %v883_v30 = vld [vmem:[#allocation3 + $0xc] sm:$0x3] }
 0x115   :  { %v2289_v41 = vmul.f32 -1.442695, %v658_v39 }
 0x116   :  { %v657_v40 = vld [vmem:[#allocation3 + $0xe] sm:$0x3] }
 0x117   :  { %v697_v42 = vadd.f32 %v657_v40, %v651_v35  ;;  %2624 = vpow2.f32 %v2289_v41 }
 0x119   :  { %v2290_v43 = vmul.f32 -1.442695, %v697_v42 }
 0x11b   :  { %2626 = vpow2.f32 %v2290_v43 }
 0x124   :  { %v2625_v44 = vpop.eup %2624 }
 0x125   :  { %v662_v45 = vadd.f32 1.0, %v2625_v44 }
 0x127   :  { %2628 = vrcp.f32 %v662_v45 }
 0x128   :  { %v2627_v46 = vpop.eup %2626 }
 0x129   :  { %v701_v47 = vadd.f32 1.0, %v2627_v46 }
 0x12b   :  { %2630 = vrcp.f32 %v701_v47 }
 0x134   :  { %v2629_v48 = vpop.eup %2628 }
 0x135   :  { %v680_v9 = vsub.f32 1.0, %v2629_v48 }
 0x138   :  { %v2631_v52 = vpop.eup %2630 }
 0x139   :  { %v719_v13 = vsub.f32 1.0, %v2631_v52 }
 0x180   :  { %v671_v49 = vpop.permute.xlu1 %670 }
 0x181   :  { %v673_v51 = vmul.f32 %v2629_v48, %v671_v49 }
 0x183   :  { %675 = vrot.lane.b32.xlu0 %v673_v51, %s2868_s23 }
 0x184   :  { %v710_v62 = vpop.permute.xlu1 %709 }
 0x185   :  { %v712_v63 = vmul.f32 %v2631_v52, %v710_v62 }
 0x187   :  { %714 = vrot.lane.b32.xlu1 %v712_v63, %s2868_s23 }
 0x18b   :  { %686 = vrot.lane.b32.xlu1 %v2979_v59, %s2860_s29 }
 0x18f   :  { %725 = vrot.lane.b32.xlu1 %v2987_v61, %s2860_s29 }
 0x1f5   :  { %v676_v0 = vpop.permute.xlu0 %675 }
 0x1f6   :  { %v678_v1 = vadd.f32 %v676_v0, %v655_v15 }
 0x1f8   :  { %2632 = vtanh.f32 %v678_v1 }
 0x1f9   :  { %v715_v2 = vpop.permute.xlu1 %714 }
 0x1fa   :  { %v717_v5 = vadd.f32 %v715_v2, %v657_v40 }
 0x1fc   :  { %2634 = vtanh.f32 %v717_v5 }
 0x1fd   :  { %v687_v8 = vpop.permute.xlu1 %686 }
 0x1fe   :  { %v689_v59 = vmul.f32 %v2629_v48, %v687_v8 }
 0x201   :  { %v726_v12 = vpop.permute.xlu1 %725 }
 0x202   :  { %v728_v16 = vmul.f32 %v2631_v52, %v726_v12 }
 0x205   :  { %v2633_v6 = vpop.eup %2632 }
 0x206   :  { %682 = vrot.lane.b32.xlu0 %v2633_v6, %s2870_s4 }
 0x209   :  { %v2635_v7 = vpop.eup %2634 }
 0x20a   :  { %721 = vrot.lane.b32.xlu0 %v2635_v7, %s2870_s4 }
 0x278   :  { %v683_v10 = vpop.permute.xlu0 %682 }
 0x279   :  { %v685_v11 = vmul.f32 %v683_v10, %v680_v9 }
 0x27b   :  { %v3069_v61 = vadd.f32 %v689_v59, %v685_v11 }
 0x27c   :  { %v722_v14 = vpop.permute.xlu0 %721 }
 0x27d   :  { %v724_v17 = vmul.f32 %v722_v14, %v719_v13  ;;  %692 = vrot.lane.b32.xlu0 %v3069_v61, %s2870_s4  ;;  %v1095_v13 = vld [vmem:[#allocation2 + $0x4] sm:$0x3] }
 0x27f   :  { %v3073_v18 = vadd.f32 %v728_v16, %v724_v17  ;;  %v1097_v16 = vld [vmem:[#allocation3 + $0xa] sm:$0x3] }
 0x281   :  { %731 = vrot.lane.b32.xlu1 %v3073_v18, %s2870_s4 }
 0x2ef   :  { %v693_v19 = vpop.permute.xlu0 %692 }
 0x2f0   :  { %696 = vst.msk [vmem:[#allocation14] sm:$0x3] %vm94_vm0, %v693_v19  ;;  %2464 = vmatmul.mubr.msk.f32.vlgmr.msra.gmra.mxu0 %vm166_vm1, %v693_v19 }
 0x2f1   :  { %2478 = vmatpush3.msra.mxu0 %v2948_v50  ;;  %2485 = vmatprep.mubr.msk.f32.mxu0 %vm2869_vm2, %v2867_v3 }
 0x2f2   :  { %2479 = vmatprep.subr.mxu0 %v2867_v3 }
 0x2f3   :  { %v732_v20 = vpop.permute.xlu1 %731  ;;  %2480 = vmatpush3.msra.mxu0 %v2956_v53 }
 0x2f4   :  { %735 = vst.msk [vmem:[#allocation15 + $0xe] sm:$0x3] %vm94_vm0, %v732_v20  ;;  %2475 = vmatmul.mubr.msk.f32.vlgmr.msra.gmra.mxu1 %vm166_vm1, %v732_v20  ;;  %2481 = vmatprep.subr.mxu0 %v2867_v3 }
 0x2f5   :  { %2482 = vmatpush3.msra.mxu0 %v2965_v55  ;;  %2489 = vmatpush3.msra.mxu1 %v2958_v54 }
 0x2f6   :  { %2483 = vmatprep.subr.mxu0 %v2867_v3  ;;  %2490 = vmatprep.subr.mxu1 %v2867_v3 }
 0x2f7   :  { %2484 = vmatpush3.msra.mxu0 %v2973_v57  ;;  %2491 = vmatpush3.msra.mxu1 %v2967_v56 }
 0x2f8   :  { %2492 = vmatprep.subr.mxu1 %v2867_v3  ;;  %2496 = vmatprep.mubr.msk.f32.mxu1 %vm2869_vm2, %v2867_v3 }
 0x2f9   :  { %2493 = vmatpush3.msra.mxu1 %v2975_v58  ;;  %2499 = vmatprep.subr.mxu0 %v2867_v3 }
 0x2fa   :  { %2494 = vmatprep.subr.mxu1 %v2867_v3 }
 0x2fb   :  { %2495 = vmatpush3.msra.mxu1 %v2983_v60 }
 0x2fc   :  { %2510 = vmatprep.subr.mxu1 %v2867_v3 }
 0x3b0   :  { %v804_v21 = vpop.f32.mrf.mxu0 }
 0x3b1   :  { %v891_v22 = vadd.f32 %v804_v21, %v3029_v4  ;;  %v884_v29 = vadd.f32 %v881_v27, %v804_v21 }
 0x3b2   :  { %v2465_v23 = vpop.f32.mrf.mxu0 }
 0x3b3   :  { %893 = vrot.lane.b32.xlu0 %v891_v22, %s2868_s23  ;;  %v2293_v31 = vmul.f32 -1.442695, %v884_v29 }
 0x3b4   :  { %v876_v24 = vpop.f32.mrf.mxu1 }
 0x3b5   :  { %v924_v25 = vadd.f32 %v876_v24, %v3043_v28  ;;  %v917_v32 = vadd.f32 %v883_v30, %v876_v24  ;;  %2636 = vpow2.f32 %v2293_v31 }
 0x3b6   :  { %v2476_v26 = vpop.f32.mrf.mxu1 }
 0x3b7   :  { %926 = vrot.lane.b32.xlu1 %v924_v25, %s2868_s23  ;;  %v2294_v33 = vmul.f32 -1.442695, %v917_v32 }
 0x3b9   :  { %2638 = vpow2.f32 %v2294_v33 }
 0x3c2   :  { %v2637_v34 = vpop.eup %2636 }
 0x3c3   :  { %v888_v35 = vadd.f32 1.0, %v2637_v34 }
 0x3c5   :  { %2640 = vrcp.f32 %v888_v35 }
 0x3c6   :  { %v2639_v36 = vpop.eup %2638 }
 0x3c7   :  { %v921_v37 = vadd.f32 1.0, %v2639_v36 }
 0x3c9   :  { %2642 = vrcp.f32 %v921_v37 }
 0x3d2   :  { %v2641_v38 = vpop.eup %2640 }
 0x3d3   :  { %v903_v49 = vsub.f32 1.0, %v2641_v38  ;;  %v909_v52 = vmul.f32 %v2641_v38, %v3069_v61 }
 0x3d6   :  { %v2643_v40 = vpop.eup %2642 }
 0x3d7   :  { %v936_v0 = vsub.f32 1.0, %v2643_v40  ;;  %v942_v2 = vmul.f32 %v2643_v40, %v3073_v18 }
 0x425   :  { %v894_v15 = vpop.permute.xlu0 %893 }
 0x426   :  { %v896_v39 = vmul.f32 %v2641_v38, %v894_v15 }
 0x428   :  { %898 = vrot.lane.b32.xlu0 %v896_v39, %s2868_s23 }
 0x429   :  { %v927_v41 = vpop.permute.xlu1 %926 }
 0x42a   :  { %v929_v42 = vmul.f32 %v2643_v40, %v927_v41 }
 0x42c   :  { %931 = vrot.lane.b32.xlu1 %v929_v42, %s2868_s23 }
 0x49a   :  { %v899_v43 = vpop.permute.xlu0 %898 }
 0x49b   :  { %v901_v44 = vadd.f32 %v899_v43, %v881_v27 }
 0x49d   :  { %2644 = vtanh.f32 %v901_v44 }
 0x49e   :  { %v932_v45 = vpop.permute.xlu1 %931 }
 0x49f   :  { %v934_v46 = vadd.f32 %v932_v45, %v883_v30 }
 0x4a1   :  { %2646 = vtanh.f32 %v934_v46 }
 0x4aa   :  { %v2645_v47 = vpop.eup %2644 }
 0x4ab   :  { %905 = vrot.lane.b32.xlu0 %v2645_v47, %s2870_s4 }
 0x4ae   :  { %v2647_v48 = vpop.eup %2646 }
 0x4af   :  { %938 = vrot.lane.b32.xlu1 %v2647_v48, %s2870_s4 }
 0x51d   :  { %v906_v51 = vpop.permute.xlu0 %905 }
 0x51e   :  { %v908_v62 = vmul.f32 %v906_v51, %v903_v49 }
 0x520   :  { %v3110_v63 = vadd.f32 %v909_v52, %v908_v62 }
 0x521   :  { %v939_v1 = vpop.permute.xlu1 %938 }
 0x522   :  { %v941_v5 = vmul.f32 %v939_v1, %v936_v0  ;;  %912 = vrot.lane.b32.xlu0 %v3110_v63, %s2870_s4  ;;  %v1309_v0 = vld [vmem:[#allocation2 + $0x6] sm:$0x3] }
 0x524   :  { %v3115_v6 = vadd.f32 %v942_v2, %v941_v5  ;;  %v1311_v2 = vld [vmem:[#allocation3 + $0x8] sm:$0x3] }
 0x526   :  { %945 = vrot.lane.b32.xlu1 %v3115_v6, %s2870_s4 }
 0x594   :  { %v913_v7 = vpop.permute.xlu0 %912 }
 0x595   :  { %916 = vst.msk [vmem:[#allocation14 + $0x2] sm:$0x3] %vm94_vm0, %v913_v7  ;;  %2486 = vmatmul.mubr.msk.f32.vlgmr.msra.gmra.mxu0 %vm166_vm1, %v913_v7 }
 0x596   :  { %2500 = vmatpush3.msra.mxu0 %v2948_v50  ;;  %2507 = vmatprep.mubr.msk.f32.mxu0 %vm2869_vm2, %v2867_v3 }
 0x597   :  { %2501 = vmatprep.subr.mxu0 %v2867_v3 }
 0x598   :  { %v946_v8 = vpop.permute.xlu1 %945  ;;  %2502 = vmatpush3.msra.mxu0 %v2956_v53 }
 0x599   :  { %949 = vst.msk [vmem:[#allocation15 + $0xc] sm:$0x3] %vm94_vm0, %v946_v8  ;;  %2497 = vmatmul.mubr.msk.f32.vlgmr.msra.gmra.mxu1 %vm166_vm1, %v946_v8  ;;  %2503 = vmatprep.subr.mxu0 %v2867_v3 }
 0x59a   :  { %2504 = vmatpush3.msra.mxu0 %v2965_v55  ;;  %2511 = vmatpush3.msra.mxu1 %v2958_v54 }
 0x59b   :  { %2505 = vmatprep.subr.mxu0 %v2867_v3  ;;  %2512 = vmatprep.subr.mxu1 %v2867_v3 }
 0x59c   :  { %2506 = vmatpush3.msra.mxu0 %v2973_v57  ;;  %2513 = vmatpush3.msra.mxu1 %v2967_v56 }
 0x59d   :  { %2514 = vmatprep.subr.mxu1 %v2867_v3  ;;  %2518 = vmatprep.mubr.msk.f32.mxu1 %vm2869_vm2, %v2867_v3 }
 0x59e   :  { %2515 = vmatpush3.msra.mxu1 %v2975_v58  ;;  %2521 = vmatprep.subr.mxu0 %v2867_v3 }
 0x59f   :  { %2516 = vmatprep.subr.mxu1 %v2867_v3 }
 0x5a0   :  { %2517 = vmatpush3.msra.mxu1 %v2983_v60 }
 0x5a1   :  { %2532 = vmatprep.subr.mxu1 %v2867_v3 }
 0x655   :  { %v1018_v9 = vpop.f32.mrf.mxu0 }
 0x656   :  { %v1105_v10 = vadd.f32 %v1018_v9, %v3029_v4  ;;  %v1098_v14 = vadd.f32 %v1095_v13, %v1018_v9 }
 0x657   :  { %v2487_v59 = vpop.f32.mrf.mxu0 }
 0x658   :  { %1107 = vrot.lane.b32.xlu0 %v1105_v10, %s2868_s23  ;;  %v2297_v17 = vmul.f32 -1.442695, %v1098_v14 }
 0x659   :  { %v1090_v11 = vpop.f32.mrf.mxu1 }
 0x65a   :  { %v1138_v12 = vadd.f32 %v1090_v11, %v3043_v28  ;;  %v1131_v18 = vadd.f32 %v1097_v16, %v1090_v11  ;;  %2648 = vpow2.f32 %v2297_v17 }
 0x65b   :  { %v2498_v61 = vpop.f32.mrf.mxu1 }
 0x65c   :  { %1140 = vrot.lane.b32.xlu1 %v1138_v12, %s2868_s23  ;;  %v2298_v19 = vmul.f32 -1.442695, %v1131_v18 }
 0x65e   :  { %2650 = vpow2.f32 %v2298_v19 }
 0x667   :  { %v2649_v20 = vpop.eup %2648 }
 0x668   :  { %v1102_v21 = vadd.f32 1.0, %v2649_v20 }
 0x66a   :  { %2652 = vrcp.f32 %v1102_v21 }
 0x66b   :  { %v2651_v22 = vpop.eup %2650 }
 0x66c   :  { %v1135_v23 = vadd.f32 1.0, %v2651_v22 }
 0x66e   :  { %2654 = vrcp.f32 %v1135_v23 }
 0x677   :  { %v2653_v24 = vpop.eup %2652 }
 0x678   :  { %v1117_v37 = vsub.f32 1.0, %v2653_v24  ;;  %v1123_v15 = vmul.f32 %v2653_v24, %v3110_v63 }
 0x67b   :  { %v2655_v27 = vpop.eup %2654 }
 0x67c   :  { %v1150_v41 = vsub.f32 1.0, %v2655_v27  ;;  %v1156_v43 = vmul.f32 %v2655_v27, %v3115_v6 }
 0x6ca   :  { %v1108_v25 = vpop.permute.xlu0 %1107 }
 0x6cb   :  { %v1110_v26 = vmul.f32 %v2653_v24, %v1108_v25 }
 0x6cd   :  { %1112 = vrot.lane.b32.xlu0 %v1110_v26, %s2868_s23 }
 0x6ce   :  { %v1141_v29 = vpop.permute.xlu1 %1140 }
 0x6cf   :  { %v1143_v30 = vmul.f32 %v2655_v27, %v1141_v29 }
 0x6d1   :  { %1145 = vrot.lane.b32.xlu1 %v1143_v30, %s2868_s23 }
 0x73f   :  { %v1113_v31 = vpop.permute.xlu0 %1112 }
 0x740   :  { %v1115_v32 = vadd.f32 %v1113_v31, %v1095_v13 }
 0x742   :  { %2656 = vtanh.f32 %v1115_v32 }
 0x743   :  { %v1146_v33 = vpop.permute.xlu1 %1145 }
 0x744   :  { %v1148_v34 = vadd.f32 %v1146_v33, %v1097_v16 }
 0x746   :  { %2658 = vtanh.f32 %v1148_v34 }
 0x74f   :  { %v2657_v35 = vpop.eup %2656 }
 0x750   :  { %1119 = vrot.lane.b32.xlu0 %v2657_v35, %s2870_s4 }
 0x753   :  { %v2659_v36 = vpop.eup %2658 }
 0x754   :  { %1152 = vrot.lane.b32.xlu1 %v2659_v36, %s2870_s4 }
 0x7c2   :  { %v1120_v38 = vpop.permute.xlu0 %1119 }
 0x7c3   :  { %v1122_v39 = vmul.f32 %v1120_v38, %v1117_v37 }
 0x7c5   :  { %v3152_v40 = vadd.f32 %v1123_v15, %v1122_v39 }
 0x7c6   :  { %v1153_v42 = vpop.permute.xlu1 %1152 }
 0x7c7   :  { %v1155_v44 = vmul.f32 %v1153_v42, %v1150_v41  ;;  %1126 = vrot.lane.b32.xlu0 %v3152_v40, %s2870_s4  ;;  %v1523_v41 = vld [vmem:[#allocation2 + $0x8] sm:$0x3] }
 0x7c9   :  { %v3157_v45 = vadd.f32 %v1156_v43, %v1155_v44  ;;  %v1525_v43 = vld [vmem:[#allocation3 + $0x6] sm:$0x3] }
 0x7cb   :  { %1159 = vrot.lane.b32.xlu1 %v3157_v45, %s2870_s4 }
 0x839   :  { %v1127_v46 = vpop.permute.xlu0 %1126 }
 0x83a   :  { %1130 = vst.msk [vmem:[#allocation14 + $0x4] sm:$0x3] %vm94_vm0, %v1127_v46  ;;  %2508 = vmatmul.mubr.msk.f32.vlgmr.msra.gmra.mxu0 %vm166_vm1, %v1127_v46 }
 0x83b   :  { %2522 = vmatpush3.msra.mxu0 %v2948_v50  ;;  %2529 = vmatprep.mubr.msk.f32.mxu0 %vm2869_vm2, %v2867_v3 }
 0x83c   :  { %2523 = vmatprep.subr.mxu0 %v2867_v3 }
 0x83d   :  { %v1160_v47 = vpop.permute.xlu1 %1159  ;;  %2524 = vmatpush3.msra.mxu0 %v2956_v53 }
 0x83e   :  { %1163 = vst.msk [vmem:[#allocation15 + $0xa] sm:$0x3] %vm94_vm0, %v1160_v47  ;;  %2519 = vmatmul.mubr.msk.f32.vlgmr.msra.gmra.mxu1 %vm166_vm1, %v1160_v47  ;;  %2525 = vmatprep.subr.mxu0 %v2867_v3 }
 0x83f   :  { %2526 = vmatpush3.msra.mxu0 %v2965_v55  ;;  %2533 = vmatpush3.msra.mxu1 %v2958_v54 }
 0x840   :  { %2527 = vmatprep.subr.mxu0 %v2867_v3  ;;  %2534 = vmatprep.subr.mxu1 %v2867_v3 }
 0x841   :  { %2528 = vmatpush3.msra.mxu0 %v2973_v57  ;;  %2535 = vmatpush3.msra.mxu1 %v2967_v56 }
 0x842   :  { %2536 = vmatprep.subr.mxu1 %v2867_v3  ;;  %2540 = vmatprep.mubr.msk.f32.mxu1 %vm2869_vm2, %v2867_v3 }
 0x843   :  { %2537 = vmatpush3.msra.mxu1 %v2975_v58  ;;  %2543 = vmatprep.subr.mxu0 %v2867_v3 }
 0x844   :  { %2538 = vmatprep.subr.mxu1 %v2867_v3 }
 0x845   :  { %2539 = vmatpush3.msra.mxu1 %v2983_v60 }
 0x846   :  { %2554 = vmatprep.subr.mxu1 %v2867_v3 }
 0x8fa   :  { %v1232_v48 = vpop.f32.mrf.mxu0 }
 0x8fb   :  { %v1319_v49 = vadd.f32 %v1232_v48, %v3029_v4  ;;  %v1312_v1 = vadd.f32 %v1309_v0, %v1232_v48 }
 0x8fc   :  { %v2509_v51 = vpop.f32.mrf.mxu0 }
 0x8fd   :  { %1321 = vrot.lane.b32.xlu0 %v1319_v49, %s2868_s23  ;;  %v2301_v5 = vmul.f32 -1.442695, %v1312_v1 }
 0x8fe   :  { %v1304_v52 = vpop.f32.mrf.mxu1 }
 0x8ff   :  { %v1352_v62 = vadd.f32 %v1304_v52, %v3043_v28  ;;  %v1345_v6 = vadd.f32 %v1311_v2, %v1304_v52  ;;  %2660 = vpow2.f32 %v2301_v5 }
 0x900   :  { %v2520_v63 = vpop.f32.mrf.mxu1 }
 0x901   :  { %1354 = vrot.lane.b32.xlu1 %v1352_v62, %s2868_s23  ;;  %v2302_v7 = vmul.f32 -1.442695, %v1345_v6 }
 0x903   :  { %2662 = vpow2.f32 %v2302_v7 }
 0x90c   :  { %v2661_v8 = vpop.eup %2660 }
 0x90d   :  { %v1316_v9 = vadd.f32 1.0, %v2661_v8 }
 0x90f   :  { %2664 = vrcp.f32 %v1316_v9 }
 0x910   :  { %v2663_v10 = vpop.eup %2662 }
 0x911   :  { %v1349_v59 = vadd.f32 1.0, %v2663_v10 }
 0x913   :  { %2666 = vrcp.f32 %v1349_v59 }
 0x91c   :  { %v2665_v11 = vpop.eup %2664 }
 0x91d   :  { %v1331_v23 = vsub.f32 1.0, %v2665_v11  ;;  %v1337_v25 = vmul.f32 %v2665_v11, %v3152_v40 }
 0x920   :  { %v2667_v13 = vpop.eup %2666 }
 0x921   :  { %v1364_v29 = vsub.f32 1.0, %v2667_v13  ;;  %v1370_v31 = vmul.f32 %v2667_v13, %v3157_v45 }
 0x96f   :  { %v1322_v12 = vpop.permute.xlu0 %1321 }
 0x970   :  { %v1324_v61 = vmul.f32 %v2665_v11, %v1322_v12 }
 0x972   :  { %1326 = vrot.lane.b32.xlu0 %v1324_v61, %s2868_s23 }
 0x973   :  { %v1355_v14 = vpop.permute.xlu1 %1354 }
 0x974   :  { %v1357_v16 = vmul.f32 %v2667_v13, %v1355_v14 }
 0x976   :  { %1359 = vrot.lane.b32.xlu1 %v1357_v16, %s2868_s23 }
 0x9e4   :  { %v1327_v17 = vpop.permute.xlu0 %1326 }
 0x9e5   :  { %v1329_v18 = vadd.f32 %v1327_v17, %v1309_v0 }
 0x9e7   :  { %2668 = vtanh.f32 %v1329_v18 }
 0x9e8   :  { %v1360_v19 = vpop.permute.xlu1 %1359 }
 0x9e9   :  { %v1362_v20 = vadd.f32 %v1360_v19, %v1311_v2 }
 0x9eb   :  { %2670 = vtanh.f32 %v1362_v20 }
 0x9f4   :  { %v2669_v21 = vpop.eup %2668 }
 0x9f5   :  { %1333 = vrot.lane.b32.xlu0 %v2669_v21, %s2870_s4 }
 0x9f8   :  { %v2671_v22 = vpop.eup %2670 }
 0x9f9   :  { %1366 = vrot.lane.b32.xlu1 %v2671_v22, %s2870_s4 }
 0xa67   :  { %v1334_v24 = vpop.permute.xlu0 %1333 }
 0xa68   :  { %v1336_v26 = vmul.f32 %v1334_v24, %v1331_v23  ;;  %v1739_v23 = vld [vmem:[#allocation3 + $0x4] sm:$0x3] }
 0xa6a   :  { %v3194_v27 = vadd.f32 %v1337_v25, %v1336_v26 }
 0xa6b   :  { %v1367_v30 = vpop.permute.xlu1 %1366 }
 0xa6c   :  { %v1369_v32 = vmul.f32 %v1367_v30, %v1364_v29  ;;  %1340 = vrot.lane.b32.xlu0 %v3194_v27, %s2870_s4 }
 0xa6e   :  { %v3199_v33 = vadd.f32 %v1370_v31, %v1369_v32 }
 0xa70   :  { %1373 = vrot.lane.b32.xlu1 %v3199_v33, %s2870_s4 }
 0xade   :  { %v1341_v34 = vpop.permute.xlu0 %1340 }
 0xadf   :  { %1344 = vst.msk [vmem:[#allocation14 + $0x6] sm:$0x3] %vm94_vm0, %v1341_v34  ;;  %2530 = vmatmul.mubr.msk.f32.vlgmr.msra.gmra.mxu0 %vm166_vm1, %v1341_v34 }
 0xae0   :  { %2544 = vmatpush3.msra.mxu0 %v2948_v50  ;;  %2551 = vmatprep.mubr.msk.f32.mxu0 %vm2869_vm2, %v2867_v3 }
 0xae1   :  { %2545 = vmatprep.subr.mxu0 %v2867_v3 }
 0xae2   :  { %v1374_v35 = vpop.permute.xlu1 %1373  ;;  %2546 = vmatpush3.msra.mxu0 %v2956_v53 }
 0xae3   :  { %1377 = vst.msk [vmem:[#allocation15 + $0x8] sm:$0x3] %vm94_vm0, %v1374_v35  ;;  %2541 = vmatmul.mubr.msk.f32.vlgmr.msra.gmra.mxu1 %vm166_vm1, %v1374_v35  ;;  %2547 = vmatprep.subr.mxu0 %v2867_v3 }
 0xae4   :  { %2548 = vmatpush3.msra.mxu0 %v2965_v55  ;;  %2555 = vmatpush3.msra.mxu1 %v2958_v54 }
 0xae5   :  { %2549 = vmatprep.subr.mxu0 %v2867_v3  ;;  %2556 = vmatprep.subr.mxu1 %v2867_v3 }
 0xae6   :  { %2550 = vmatpush3.msra.mxu0 %v2973_v57  ;;  %2557 = vmatpush3.msra.mxu1 %v2967_v56 }
 0xae7   :  { %2558 = vmatprep.subr.mxu1 %v2867_v3  ;;  %2562 = vmatprep.mubr.msk.f32.mxu1 %vm2869_vm2, %v2867_v3 }
 0xae8   :  { %2559 = vmatpush3.msra.mxu1 %v2975_v58  ;;  %2565 = vmatprep.subr.mxu0 %v2867_v3 }
 0xae9   :  { %2560 = vmatprep.subr.mxu1 %v2867_v3 }
 0xaea   :  { %2561 = vmatpush3.msra.mxu1 %v2983_v60 }
 0xaeb   :  { %2576 = vmatprep.subr.mxu1 %v2867_v3 }
 0xb9f   :  { %v1446_v36 = vpop.f32.mrf.mxu0 }
 0xba0   :  { %v1533_v37 = vadd.f32 %v1446_v36, %v3029_v4  ;;  %v1526_v42 = vadd.f32 %v1523_v41, %v1446_v36 }
 0xba1   :  { %v2531_v38 = vpop.f32.mrf.mxu0 }
 0xba2   :  { %1535 = vrot.lane.b32.xlu0 %v1533_v37, %s2868_s23  ;;  %v2305_v44 = vmul.f32 -1.442695, %v1526_v42 }
 0xba3   :  { %v1518_v15 = vpop.f32.mrf.mxu1 }
 0xba4   :  { %v1566_v39 = vadd.f32 %v1518_v15, %v3043_v28  ;;  %v1559_v45 = vadd.f32 %v1525_v43, %v1518_v15  ;;  %2672 = vpow2.f32 %v2305_v44 }
 0xba5   :  { %v2542_v40 = vpop.f32.mrf.mxu1 }
 0xba6   :  { %1568 = vrot.lane.b32.xlu1 %v1566_v39, %s2868_s23  ;;  %v2306_v46 = vmul.f32 -1.442695, %v1559_v45 }
 0xba8   :  { %2674 = vpow2.f32 %v2306_v46 }
 0xbb1   :  { %v2673_v47 = vpop.eup %2672 }
 0xbb2   :  { %v1530_v48 = vadd.f32 1.0, %v2673_v47 }
 0xbb4   :  { %2676 = vrcp.f32 %v1530_v48 }
 0xbb5   :  { %v2675_v49 = vpop.eup %2674 }
 0xbb6   :  { %v1563_v51 = vadd.f32 1.0, %v2675_v49 }
 0xbb8   :  { %2678 = vrcp.f32 %v1563_v51 }
 0xbc1   :  { %v2677_v52 = vpop.eup %2676 }
 0xbc2   :  { %v1545_v59 = vsub.f32 1.0, %v2677_v52  ;;  %v1551_v12 = vmul.f32 %v2677_v52, %v3194_v27 }
 0xbc5   :  { %v2679_v0 = vpop.eup %2678 }
 0xbc6   :  { %v1578_v14 = vsub.f32 1.0, %v2679_v0  ;;  %v1584_v17 = vmul.f32 %v2679_v0, %v3199_v33 }
 0xc14   :  { %v1536_v62 = vpop.permute.xlu0 %1535 }
 0xc15   :  { %v1538_v63 = vmul.f32 %v2677_v52, %v1536_v62 }
 0xc17   :  { %1540 = vrot.lane.b32.xlu0 %v1538_v63, %s2868_s23  ;;  %v2720_v63 = vld [vmem:[#allocation12 + $0x18] sm:$0xff] }
 0xc18   :  { %v1569_v1 = vpop.permute.xlu1 %1568 }
 0xc19   :  { %v1571_v2 = vmul.f32 %v2679_v0, %v1569_v1  ;;  %v2721_v1 = vld [vmem:[#allocation12 + $0x10] sm:$0xff] }
 0xc1b   :  { %1573 = vrot.lane.b32.xlu1 %v1571_v2, %s2868_s23  ;;  %v2722_v2 = vld [vmem:[#allocation12 + $0x8] sm:$0xff] }
 0xc89   :  { %v1541_v5 = vpop.permute.xlu0 %1540 }
 0xc8a   :  { %v1543_v6 = vadd.f32 %v1541_v5, %v1523_v41  ;;  %v2723_v5 = vld [vmem:[#allocation12 + $0x38] sm:$0xff] }
 0xc8c   :  { %2680 = vtanh.f32 %v1543_v6  ;;  %v2724_v6 = vld [vmem:[#allocation12] sm:$0xff] }
 0xc8d   :  { %v1574_v7 = vpop.permute.xlu1 %1573 }
 0xc8e   :  { %v1576_v8 = vadd.f32 %v1574_v7, %v1525_v43  ;;  %v2725_v7 = vld [vmem:[#allocation12 + $0x30] sm:$0xff] }
 0xc90   :  { %2682 = vtanh.f32 %v1576_v8  ;;  %v2726_v8 = vld [vmem:[#allocation12 + $0x28] sm:$0xff] }
 0xc99   :  { %v2681_v9 = vpop.eup %2680 }
 0xc9a   :  { %1547 = vrot.lane.b32.xlu0 %v2681_v9, %s2870_s4  ;;  %v2727_v9 = vld [vmem:[#allocation12 + $0x20] sm:$0xff] }
 0xc9d   :  { %v2683_v10 = vpop.eup %2682 }
 0xc9e   :  { %1580 = vrot.lane.b32.xlu1 %v2683_v10, %s2870_s4 }
 0xd0c   :  { %v1548_v11 = vpop.permute.xlu0 %1547 }
 0xd0d   :  { %v1550_v61 = vmul.f32 %v1548_v11, %v1545_v59 }
 0xd0f   :  { %v3236_v13 = vadd.f32 %v1551_v12, %v1550_v61 }
 0xd10   :  { %v1581_v16 = vpop.permute.xlu1 %1580 }
 0xd11   :  { %v1583_v18 = vmul.f32 %v1581_v16, %v1578_v14  ;;  %1554 = vrot.lane.b32.xlu0 %v3236_v13, %s2870_s4  ;;  %v1951_v14 = vld [vmem:[#allocation2 + $0xc] sm:$0x3] }
 0xd13   :  { %v3241_v19 = vadd.f32 %v1584_v17, %v1583_v18  ;;  %v1953_v17 = vld [vmem:[#allocation3 + $0x2] sm:$0x3] }
 0xd15   :  { %1587 = vrot.lane.b32.xlu1 %v3241_v19, %s2870_s4 }
 0xd83   :  { %v1555_v20 = vpop.permute.xlu0 %1554 }
 0xd84   :  { %1558 = vst.msk [vmem:[#allocation14 + $0x8] sm:$0x3] %vm94_vm0, %v1555_v20  ;;  %2552 = vmatmul.mubr.msk.f32.vlgmr.msra.gmra.mxu0 %vm166_vm1, %v1555_v20 }
 0xd85   :  { %2566 = vmatpush3.msra.mxu0 %v2948_v50  ;;  %2573 = vmatprep.mubr.msk.f32.mxu0 %vm2869_vm2, %v2867_v3 }
 0xd86   :  { %2567 = vmatprep.subr.mxu0 %v2867_v3 }
 0xd87   :  { %v1588_v21 = vpop.permute.xlu1 %1587  ;;  %2568 = vmatpush3.msra.mxu0 %v2956_v53 }
 0xd88   :  { %1591 = vst.msk [vmem:[#allocation15 + $0x6] sm:$0x3] %vm94_vm0, %v1588_v21  ;;  %2563 = vmatmul.mubr.msk.f32.vlgmr.msra.gmra.mxu1 %vm166_vm1, %v1588_v21  ;;  %2569 = vmatprep.subr.mxu0 %v2867_v3 }
 0xd89   :  { %2570 = vmatpush3.msra.mxu0 %v2965_v55  ;;  %2577 = vmatpush3.msra.mxu1 %v2958_v54 }
 0xd8a   :  { %2571 = vmatprep.subr.mxu0 %v2867_v3  ;;  %2578 = vmatprep.subr.mxu1 %v2867_v3 }
 0xd8b   :  { %2572 = vmatpush3.msra.mxu0 %v2973_v57  ;;  %2579 = vmatpush3.msra.mxu1 %v2967_v56 }
 0xd8c   :  { %2580 = vmatprep.subr.mxu1 %v2867_v3  ;;  %2584 = vmatprep.mubr.msk.f32.mxu1 %vm2869_vm2, %v2867_v3 }
 0xd8d   :  { %2581 = vmatpush3.msra.mxu1 %v2975_v58  ;;  %2587 = vmatprep.subr.mxu0 %v2867_v3  ;;  %v1737_v58 = vld [vmem:[#allocation2 + $0xa] sm:$0x3] }
 0xd8e   :  { %2582 = vmatprep.subr.mxu1 %v2867_v3 }
 0xd8f   :  { %2583 = vmatpush3.msra.mxu1 %v2983_v60 }
 0xd90   :  { %2598 = vmatprep.subr.mxu1 %v2867_v3 }
 0xe44   :  { %v1660_v50 = vpop.f32.mrf.mxu0 }
 0xe45   :  { %v1747_v53 = vadd.f32 %v1660_v50, %v3029_v4  ;;  %v1740_v22 = vadd.f32 %v1737_v58, %v1660_v50 }
 0xe46   :  { %v2553_v54 = vpop.f32.mrf.mxu0 }
 0xe47   :  { %1749 = vrot.lane.b32.xlu0 %v1747_v53, %s2868_s23  ;;  %v2309_v24 = vmul.f32 -1.442695, %v1740_v22 }
 0xe48   :  { %v1732_v55 = vpop.f32.mrf.mxu1 }
 0xe49   :  { %v1780_v56 = vadd.f32 %v1732_v55, %v3043_v28  ;;  %v1773_v25 = vadd.f32 %v1739_v23, %v1732_v55  ;;  %2684 = vpow2.f32 %v2309_v24 }
 0xe4a   :  { %v2564_v57 = vpop.f32.mrf.mxu1 }
 0xe4b   :  { %1782 = vrot.lane.b32.xlu1 %v1780_v56, %s2868_s23  ;;  %v2310_v60 = vmul.f32 -1.442695, %v1773_v25 }
 0xe4d   :  { %2686 = vpow2.f32 %v2310_v60 }
 0xe56   :  { %v2685_v26 = vpop.eup %2684 }
 0xe57   :  { %v1744_v27 = vadd.f32 1.0, %v2685_v26 }
 0xe59   :  { %2688 = vrcp.f32 %v1744_v27 }
 0xe5a   :  { %v2687_v29 = vpop.eup %2686 }
 0xe5b   :  { %v1777_v30 = vadd.f32 1.0, %v2687_v29 }
 0xe5d   :  { %2690 = vrcp.f32 %v1777_v30 }
 0xe66   :  { %v2689_v31 = vpop.eup %2688 }
 0xe67   :  { %v1759_v42 = vsub.f32 1.0, %v2689_v31  ;;  %v1765_v44 = vmul.f32 %v2689_v31, %v3236_v13 }
 0xe6a   :  { %v2691_v34 = vpop.eup %2690 }
 0xe6b   :  { %v1792_v47 = vsub.f32 1.0, %v2691_v34  ;;  %v1798_v49 = vmul.f32 %v2691_v34, %v3241_v19 }
 0xeb9   :  { %v1750_v32 = vpop.permute.xlu0 %1749 }
 0xeba   :  { %v1752_v33 = vmul.f32 %v2689_v31, %v1750_v32 }
 0xebc   :  { %1754 = vrot.lane.b32.xlu0 %v1752_v33, %s2868_s23 }
 0xebd   :  { %v1783_v35 = vpop.permute.xlu1 %1782 }
 0xebe   :  { %v1785_v36 = vmul.f32 %v2691_v34, %v1783_v35 }
 0xec0   :  { %1787 = vrot.lane.b32.xlu1 %v1785_v36, %s2868_s23 }
 0xf2e   :  { %v1755_v37 = vpop.permute.xlu0 %1754 }
 0xf2f   :  { %v1757_v38 = vadd.f32 %v1755_v37, %v1737_v58 }
 0xf31   :  { %2692 = vtanh.f32 %v1757_v38 }
 0xf32   :  { %v1788_v15 = vpop.permute.xlu1 %1787 }
 0xf33   :  { %v1790_v39 = vadd.f32 %v1788_v15, %v1739_v23 }
 0xf35   :  { %2694 = vtanh.f32 %v1790_v39 }
 0xf3e   :  { %v2693_v40 = vpop.eup %2692 }
 0xf3f   :  { %1761 = vrot.lane.b32.xlu0 %v2693_v40, %s2870_s4 }
 0xf42   :  { %v2695_v41 = vpop.eup %2694 }
 0xf43   :  { %1794 = vrot.lane.b32.xlu1 %v2695_v41, %s2870_s4 }
 0xfb1   :  { %v1762_v43 = vpop.permute.xlu0 %1761 }
 0xfb2   :  { %v1764_v45 = vmul.f32 %v1762_v43, %v1759_v42 }
 0xfb4   :  { %v3278_v46 = vadd.f32 %v1765_v44, %v1764_v45 }
 0xfb5   :  { %v1795_v48 = vpop.permute.xlu1 %1794 }
 0xfb6   :  { %v1797_v51 = vmul.f32 %v1795_v48, %v1792_v47  ;;  %1768 = vrot.lane.b32.xlu0 %v3278_v46, %s2870_s4  ;;  %v2166_v48 = vld [vmem:[#allocation3] sm:$0x3] }
 0xfb8   :  { %v3283_v52 = vadd.f32 %v1798_v49, %v1797_v51 }
 0xfba   :  { %1801 = vrot.lane.b32.xlu1 %v3283_v52, %s2870_s4 }
0x1028   :  { %v1769_v62 = vpop.permute.xlu0 %1768 }
0x1029   :  { %1772 = vst.msk [vmem:[#allocation14 + $0xa] sm:$0x3] %vm94_vm0, %v1769_v62  ;;  %2574 = vmatmul.mubr.msk.f32.vlgmr.msra.gmra.mxu0 %vm166_vm1, %v1769_v62 }
0x102a   :  { %2588 = vmatpush3.msra.mxu0 %v2720_v63  ;;  %2595 = vmatprep.mubr.msk.f32.mxu0 %vm2869_vm2, %v2867_v3 }
0x102b   :  { %2589 = vmatprep.subr.mxu0 %v2867_v3 }
0x102c   :  { %v1802_v0 = vpop.permute.xlu1 %1801  ;;  %2590 = vmatpush3.msra.mxu0 %v2721_v1 }
0x102d   :  { %1805 = vst.msk [vmem:[#allocation15 + $0x4] sm:$0x3] %vm94_vm0, %v1802_v0  ;;  %2585 = vmatmul.mubr.msk.f32.vlgmr.msra.gmra.mxu1 %vm166_vm1, %v1802_v0  ;;  %2591 = vmatprep.subr.mxu0 %v2867_v3 }
0x102e   :  { %2592 = vmatpush3.msra.mxu0 %v2722_v2  ;;  %2599 = vmatpush3.msra.mxu1 %v2723_v5 }
0x102f   :  { %2593 = vmatprep.subr.mxu0 %v2867_v3  ;;  %2600 = vmatprep.subr.mxu1 %v2867_v3 }
0x1030   :  { %2594 = vmatpush3.msra.mxu0 %v2724_v6  ;;  %2601 = vmatpush3.msra.mxu1 %v2725_v7 }
0x1031   :  { %2602 = vmatprep.subr.mxu1 %v2867_v3  ;;  %2606 = vmatprep.mubr.msk.f32.mxu1 %vm2869_vm2, %v2867_v3 }
0x1032   :  { %2603 = vmatpush3.msra.mxu1 %v2726_v8 }
0x1033   :  { %2604 = vmatprep.subr.mxu1 %v2867_v3 }
0x1034   :  { %2605 = vmatpush3.msra.mxu1 %v2727_v9 }
0x10e9   :  { %v1874_v10 = vpop.f32.mrf.mxu0 }
0x10ea   :  { %v1961_v59 = vadd.f32 %v1874_v10, %v3029_v4  ;;  %v1954_v16 = vadd.f32 %v1951_v14, %v1874_v10 }
0x10eb   :  { %v2575_v11 = vpop.f32.mrf.mxu0 }
0x10ec   :  { %1963 = vrot.lane.b32.xlu0 %v1961_v59, %s2868_s23  ;;  %v2313_v18 = vmul.f32 -1.442695, %v1954_v16 }
0x10ed   :  { %v1946_v12 = vpop.f32.mrf.mxu1 }
0x10ee   :  { %v1994_v61 = vadd.f32 %v1946_v12, %v3043_v28  ;;  %v1987_v19 = vadd.f32 %v1953_v17, %v1946_v12  ;;  %2696 = vpow2.f32 %v2313_v18 }
0x10ef   :  { %v2586_v13 = vpop.f32.mrf.mxu1 }
0x10f0   :  { %1996 = vrot.lane.b32.xlu1 %v1994_v61, %s2868_s23  ;;  %v2314_v3 = vmul.f32 -1.442695, %v1987_v19 }
0x10f2   :  { %2698 = vpow2.f32 %v2314_v3 }
0x10fb   :  { %v2697_v20 = vpop.eup %2696 }
0x10fc   :  { %v1958_v21 = vadd.f32 1.0, %v2697_v20 }
0x10fe   :  { %2700 = vrcp.f32 %v1958_v21 }
0x10ff   :  { %v2699_v50 = vpop.eup %2698 }
0x1100   :  { %v1991_v53 = vadd.f32 1.0, %v2699_v50 }
0x1102   :  { %2702 = vrcp.f32 %v1991_v53 }
0x110b   :  { %v2701_v54 = vpop.eup %2700 }
0x110c   :  { %v1973_v29 = vsub.f32 1.0, %v2701_v54  ;;  %v1979_v31 = vmul.f32 %v2701_v54, %v3278_v46  ;;  %v2165_v46 = vld [vmem:[#allocation2 + $0xe] sm:$0x3] }
0x110f   :  { %v2703_v57 = vpop.eup %2702 }
0x1110   :  { %v2006_v34 = vsub.f32 1.0, %v2703_v57  ;;  %v2012_v36 = vmul.f32 %v2703_v57, %v3283_v52 }
0x115e   :  { %v1964_v55 = vpop.permute.xlu0 %1963 }
0x115f   :  { %v1966_v56 = vmul.f32 %v2701_v54, %v1964_v55 }
0x1161   :  { %1968 = vrot.lane.b32.xlu0 %v1966_v56, %s2868_s23 }
0x1162   :  { %v1997_v58 = vpop.permute.xlu1 %1996 }
0x1163   :  { %v1999_v22 = vmul.f32 %v2703_v57, %v1997_v58 }
0x1165   :  { %2001 = vrot.lane.b32.xlu1 %v1999_v22, %s2868_s23 }
0x11d3   :  { %v1969_v23 = vpop.permute.xlu0 %1968 }
0x11d4   :  { %v1971_v24 = vadd.f32 %v1969_v23, %v1951_v14 }
0x11d6   :  { %2704 = vtanh.f32 %v1971_v24 }
0x11d7   :  { %v2002_v25 = vpop.permute.xlu1 %2001 }
0x11d8   :  { %v2004_v60 = vadd.f32 %v2002_v25, %v1953_v17 }
0x11da   :  { %2706 = vtanh.f32 %v2004_v60 }
0x11e3   :  { %v2705_v26 = vpop.eup %2704 }
0x11e4   :  { %1975 = vrot.lane.b32.xlu0 %v2705_v26, %s2870_s4 }
0x11e7   :  { %v2707_v27 = vpop.eup %2706 }
0x11e8   :  { %2008 = vrot.lane.b32.xlu1 %v2707_v27, %s2870_s4 }
0x1256   :  { %v1976_v30 = vpop.permute.xlu0 %1975 }
0x1257   :  { %v1978_v32 = vmul.f32 %v1976_v30, %v1973_v29 }
0x1259   :  { %v1980_v33 = vadd.f32 %v1979_v31, %v1978_v32 }
0x125a   :  { %v2009_v35 = vpop.permute.xlu1 %2008 }
0x125b   :  { %v2011_v37 = vmul.f32 %v2009_v35, %v2006_v34  ;;  %1982 = vrot.lane.b32.xlu0 %v1980_v33, %s2870_s4 }
0x125d   :  { %v2013_v38 = vadd.f32 %v2012_v36, %v2011_v37 }
0x125f   :  { %2015 = vrot.lane.b32.xlu1 %v2013_v38, %s2870_s4 }
0x12cd   :  { %v1983_v15 = vpop.permute.xlu0 %1982 }
0x12ce   :  { %1986 = vst.msk [vmem:[#allocation14 + $0xc] sm:$0x3] %vm94_vm0, %v1983_v15  ;;  %2596 = vmatmul.mubr.msk.f32.vlgmr.msra.gmra.mxu0 %vm166_vm1, %v1983_v15 }
0x12d1   :  { %v2016_v39 = vpop.permute.xlu1 %2015 }
0x12d2   :  { %2019 = vst.msk [vmem:[#allocation15 + $0x2] sm:$0x3] %vm94_vm0, %v2016_v39  ;;  %2607 = vmatmul.mubr.msk.f32.vlgmr.msra.gmra.mxu1 %vm166_vm1, %v2016_v39 }
0x138e   :  { %v2088_v40 = vpop.f32.mrf.mxu0 }
0x138f   :  { %v2174_v41 = vadd.f32 %v2088_v40, %v3029_v4  ;;  %v2167_v47 = vadd.f32 %v2165_v46, %v2088_v40 }
0x1390   :  { %v2597_v42 = vpop.f32.mrf.mxu0 }
0x1391   :  { %2176 = vrot.lane.b32.xlu0 %v2174_v41, %s2868_s23  ;;  %v2317_v49 = vmul.f32 -1.442695, %v2167_v47 }
0x1392   :  { %v2160_v43 = vpop.f32.mrf.mxu1 }
0x1393   :  { %v2207_v44 = vadd.f32 %v2160_v43, %v3043_v28  ;;  %v2200_v51 = vadd.f32 %v2166_v48, %v2160_v43  ;;  %2708 = vpow2.f32 %v2317_v49 }
0x1394   :  { %v2608_v45 = vpop.f32.mrf.mxu1 }
0x1395   :  { %2209 = vrot.lane.b32.xlu1 %v2207_v44, %s2868_s23  ;;  %v2318_v52 = vmul.f32 -1.442695, %v2200_v51 }
0x1397   :  { %2710 = vpow2.f32 %v2318_v52 }
0x13a0   :  { %v2709_v62 = vpop.eup %2708 }
0x13a1   :  { %v2171_v63 = vadd.f32 1.0, %v2709_v62 }
0x13a3   :  { %2712 = vrcp.f32 %v2171_v63 }
0x13a4   :  { %v2711_v4 = vpop.eup %2710 }
0x13a5   :  { %v2204_v0 = vadd.f32 1.0, %v2711_v4 }
0x13a7   :  { %2714 = vrcp.f32 %v2204_v0 }
0x13b0   :  { %v2713_v1 = vpop.eup %2712 }
0x13b1   :  { %v2186_v61 = vsub.f32 1.0, %v2713_v1  ;;  %v2192_v14 = vmul.f32 %v2713_v1, %v1980_v33 }
0x13b4   :  { %v2715_v5 = vpop.eup %2714 }
0x13b5   :  { %v2219_v18 = vsub.f32 1.0, %v2715_v5  ;;  %v2225_v3 = vmul.f32 %v2715_v5, %v2013_v38 }
0x1403   :  { %v2177_v2 = vpop.permute.xlu0 %2176 }
0x1404   :  { %v2179_v28 = vmul.f32 %v2713_v1, %v2177_v2 }
0x1406   :  { %2181 = vrot.lane.b32.xlu0 %v2179_v28, %s2868_s23 }
0x1407   :  { %v2210_v6 = vpop.permute.xlu1 %2209 }
0x1408   :  { %v2212_v7 = vmul.f32 %v2715_v5, %v2210_v6 }
0x140a   :  { %2214 = vrot.lane.b32.xlu1 %v2212_v7, %s2868_s23 }
0x1478   :  { %v2182_v8 = vpop.permute.xlu0 %2181 }
0x1479   :  { %v2184_v9 = vadd.f32 %v2182_v8, %v2165_v46 }
0x147b   :  { %2716 = vtanh.f32 %v2184_v9 }
0x147c   :  { %v2215_v10 = vpop.permute.xlu1 %2214 }
0x147d   :  { %v2217_v59 = vadd.f32 %v2215_v10, %v2166_v48 }
0x147f   :  { %2718 = vtanh.f32 %v2217_v59 }
0x1488   :  { %v2717_v11 = vpop.eup %2716 }
0x1489   :  { %2188 = vrot.lane.b32.xlu0 %v2717_v11, %s2870_s4 }
0x148c   :  { %v2719_v12 = vpop.eup %2718 }
0x148d   :  { %2221 = vrot.lane.b32.xlu1 %v2719_v12, %s2870_s4 }
0x14fb   :  { %v2189_v13 = vpop.permute.xlu0 %2188 }
0x14fc   :  { %v2191_v16 = vmul.f32 %v2189_v13, %v2186_v61 }
0x14fe   :  { %v2193_v17 = vadd.f32 %v2192_v14, %v2191_v16 }
0x14ff   :  { %v2222_v19 = vpop.permute.xlu1 %2221 }
0x1500   :  { %v2224_v20 = vmul.f32 %v2222_v19, %v2219_v18  ;;  %2195 = vrot.lane.b32.xlu0 %v2193_v17, %s2870_s4 }
0x1502   :  { %v2226_v21 = vadd.f32 %v2225_v3, %v2224_v20 }
0x1504   :  { %2228 = vrot.lane.b32.xlu1 %v2226_v21, %s2870_s4 }
0x1572   :  { %v2196_v50 = vpop.permute.xlu0 %2195 }
0x1573   :  { %2199 = vst.msk [vmem:[#allocation14 + $0xe] sm:$0x3] %vm94_vm0, %v2196_v50  ;;  %2232 = vst.msk [vmem:[#allocation4] sm:$0x3] %vm94_vm0, %v2196_v50 }
0x1574   :  { %2819 = shalt.err (!%p2816_p10)
}
0x1575   :  { %2245 = dma.vmem_to_hbm [thread:$0]  %s2240_s9, 256, %s3349_s6, [#allocation8], %s2860_s29, %s2860_s29, %s2861_s30  }
0x1576   :  { %v2229_v53 = vpop.permute.xlu1 %2228  ;;  %s2828_s15 = scalar_lea.vmem %s2256_s11, 256  ;;  %p2833_p12 = scmp.lt.s32.totalorder %s2256_s11, %s2256_s11 }
0x1577   :  { %2231 = vst.msk [vmem:[#allocation15] sm:$0x3] %vm94_vm0, %v2229_v53  ;;  %2233 = vst.msk [vmem:[#allocation5] sm:$0x3] %vm94_vm0, %v2229_v53  ;;  %p2829_p11 = scmp.ne.s32.totalorder %s2256_s11, %s2828_s15  ;;  %p2834_p13 = scmp.lt.s32.totalorder %s2828_s15, %s2828_s15 }
0x1579   :  { %p2835_p0 = por %p2834_p13, %p2833_p12 }
0x157b   :  { %p2836_p1 = pnand %p2835_p0, %p2829_p11 }
0x157d   :  { %2839 = shalt.err (!%p2836_p1)
}
0x157e   :  { %2261 = dma.vmem_to_hbm [thread:$0]  %s2256_s11, 256, %s3350_s7, [#allocation16], %s2860_s29, %s2860_s29, %s2861_s30  }
0x157f   :  { %2854 = dma.done.wait [#allocation8], 256  }
0x1580   :  { %2855 = vsyncadd [#allocation8], 4294967040 }
0x1581   :  { %2856 = dma.done.wait [#allocation16], 256  }
0x1582   :  { %2857 = vsyncadd [#allocation16], 4294967040 }
0x1583   :  { %2268 = vsyncpa [#allocation7], 1 }
0x1584   :  { %2269 = vsyncpa [#allocation10], 1 }
0x1585   :  { %2270 = vsyncpa [#allocation13], 1 }
0x1586   :  { %2271 = vsyncpa [#allocation8], 1 }
0x1587   :  { %2272 = vsyncpa [#allocation16], 1 }

</bundles_post_ra>
